<compile_context>
chip_gen: v7x
topology: tpu7x:2x2x1
jax: 0.10.0
libtpu: 0.0.40
codegen_flags: <defaults>
</compile_context>

<pallas_src>
from functools import partial

import jax
import jax.numpy as jnp
from jax.experimental import pallas as pl
from jax.experimental.pallas import tpu as pltpu


def _round_up(x, m):
    return ((x + m - 1) // m) * m


def _cnn_kernel(n_filters, l1, l2, l_pad, s_pad,
                ids_ref, vec_ref, wf_ref, bf_ref, fcw_ref, fcb_ref, out_ref):
    """Fused embedding gather + conv1/conv2 + ReLU + masked max-pool + FC + sigmoid."""
    v_pad, emb_dim = vec_ref.shape
    fs_max = wf_ref.shape[0]
    np_ = wf_ref.shape[2]
    tb = out_ref.shape[0]
    rows = tb * s_pad                     # one gathered row per (sample, position)

    # --- fused embedding gather: exact 0/1 one-hot (bf16) @ bf16 table, 1 MXU pass ---
    tok = ids_ref[...]                                        # (rows, 1) int32
    iota = jax.lax.broadcasted_iota(jnp.int32, (rows, v_pad), 1)
    onehot = (iota == tok).astype(jnp.bfloat16)               # 0/1 exact in bf16
    emb = jnp.dot(onehot, vec_ref[...],
                  preferred_element_type=jnp.float32)         # (rows, E): exact row select
    emb = emb.reshape(tb, s_pad, emb_dim)

    # --- conv1 + conv2 fused into lane blocks, per-tap shifted slice @ W_k on MXU ---
    acc = jnp.zeros((tb * l_pad, np_), jnp.float32)
    for k in range(fs_max):                                   # fs_max is static -> unrolled
        x_k = emb[:, k:k + l_pad, :].reshape(tb * l_pad, emb_dim)
        acc = acc + jnp.dot(x_k.astype(jnp.bfloat16), wf_ref[k],
                            preferred_element_type=jnp.float32)
    acc = jnp.maximum(acc + bf_ref[...], 0.0)                 # bias + ReLU

    # --- mask invalid window rows per branch, max-pool over time ---
    acc = acc.reshape(tb, l_pad, np_)
    t_iota = jax.lax.broadcasted_iota(jnp.int32, (tb, l_pad, np_), 1)
    f_iota = jax.lax.broadcasted_iota(jnp.int32, (tb, l_pad, np_), 2)
    valid = t_iota < jnp.where(f_iota < n_filters, l1, l2)
    pooled = jnp.max(jnp.where(valid, acc, 0.0), axis=1)      # (tb, np_); ReLU>=0 -> 0 base ok

    # --- FC head on the VPU (mul + lane reduce) + sigmoid, lane-dense store ---
    logit = jnp.sum(pooled * fcw_ref[...], axis=-1, keepdims=True) + fcb_ref[0, 0]
    out_ref[...] = jnp.broadcast_to(jax.nn.sigmoid(logit), (tb, np_))


def cnn_forward(x, vectors, w1, b1, w2, b2, fcw, fcb, *, batch_tile=16):
    """x: (seq_len, batch) int32 token ids (the PyTorch forward transposes internally)."""
    S, B = x.shape
    V, E = vectors.shape
    fs1, F = w1.shape[0], w1.shape[2]
    fs2 = w2.shape[0]
    fs_max = max(fs1, fs2)
    l1, l2 = S - fs1 + 1, S - fs2 + 1                 # valid conv output lengths
    assert l1 > 0 and l2 > 0, "sequence must be at least as long as the largest filter"
    assert V >= 1 and E >= 1

    NP = 128                                          # lane-padded fused-filter dim
    l_pad = _round_up(max(l1, l2), 8)                 # sublane-aligned window count
    s_pad = _round_up(max(S, l_pad + fs_max - 1), 8)  # token positions needed per sample
    v_pad = _round_up(V, 128)

    # Batch tile: sublane-aligned; big for large B (fills MXU rows), halved for
    # small B so the "parallel" grid axis has >=2 steps (v7x megacore).
    tb = batch_tile
    if B <= tb:
        tb = max(8, _round_up(max(1, (B + 1) // 2), 8))
    tb = _round_up(tb, 8)
    b_pad = _round_up(B, tb)

    # --- base token ids only (no im2col duplication, no (B,S,E) activations in HBM) ---
    ids = jnp.pad(x.T.astype(jnp.int32), ((0, b_pad - B), (0, s_pad - S)))
    ids_col = ids.reshape(b_pad * s_pad, 1)           # lane-1 column: kernel-friendly layout

    # --- flat bf16 embedding table (exact row-select gather on the MXU) ---
    vec_pad = jnp.zeros((v_pad, E), jnp.bfloat16).at[:V].set(vectors.astype(jnp.bfloat16))

    # --- both conv branches fused into one lane-padded per-tap weight slab (bf16) ---
    w_f = jnp.zeros((fs_max, E, NP), jnp.float32)
    w_f = w_f.at[:fs1, :, :F].set(w1.astype(jnp.float32))
    w_f = w_f.at[:fs2, :, F:2 * F].set(w2.astype(jnp.float32))
    w_f = w_f.astype(jnp.bfloat16)
    b_f = (jnp.zeros((1, NP), jnp.float32)
           .at[0, :F].set(b1.reshape(-1).astype(jnp.float32))
           .at[0, F:2 * F].set(b2.reshape(-1).astype(jnp.float32)))
    fcw_row = jnp.zeros((1, NP), jnp.float32).at[0, :2 * F].set(
        fcw.reshape(-1).astype(jnp.float32))
    fcb_s = fcb.reshape(1, 1).astype(jnp.float32)

    def _invariant_spec(shape, single_buffer):
        zero = (0,) * len(shape)
        if single_buffer:
            return pl.BlockSpec(shape, lambda i: zero, pipeline_mode=pl.Buffered(1))
        return pl.BlockSpec(shape, lambda i: zero)

    def _run(single_buffer):
        out = pl.pallas_call(
            partial(_cnn_kernel, F, l1, l2, l_pad, s_pad),
            out_shape=jax.ShapeDtypeStruct((b_pad, NP), jnp.float32),
            grid=(b_pad // tb,),
            in_specs=[
                pl.BlockSpec((tb * s_pad, 1), lambda i: (i, 0)),    # token ids
                _invariant_spec((v_pad, E), single_buffer),         # embedding table (bf16)
                _invariant_spec((fs_max, E, NP), single_buffer),    # fused conv weights (bf16)
                _invariant_spec((1, NP), single_buffer),            # fused conv bias (f32)
                _invariant_spec((1, NP), single_buffer),            # fc weights (f32)
                pl.BlockSpec(memory_space=pltpu.MemorySpace.SMEM),  # fc bias scalar
            ],
            out_specs=pl.BlockSpec((tb, NP), lambda i: (i, 0)),
            compiler_params=pltpu.CompilerParams(
                dimension_semantics=("parallel",)),
        )(ids_col, vec_pad, w_f, b_f, fcw_row, fcb_s)
        return jax.block_until_ready(out)

    try:
        out = _run(True)      # single-buffer grid-invariant operands (v7x VMEM headroom)
    except Exception:         # pl.Buffered(1) unsupported on this JAX build -> default buffering
        out = _run(False)
    return out[:B, 0]                                                  # (B,)


def _reference_forward(x, vectors, w1, b1, w2, b2, fcw, fcb):
    """Pure-JAX reference mirroring the PyTorch forward (sanity check)."""
    emb = jnp.take(vectors.astype(jnp.float32), x.T, axis=0)          # (B, S, E)
    B, S, E = emb.shape

    def conv_pool(w, b):
        fs = w.shape[0]
        L = S - fs + 1
        acc = jnp.zeros((B, L, w.shape[2]), jnp.float32)
        for k in range(fs):
            acc = acc + jnp.einsum('ble,ef->blf', emb[:, k:k + L, :],
                                   w[k].astype(jnp.float32), precision='highest')
        acc = jnp.maximum(acc + b.reshape(1, 1, -1), 0.0)
        return jnp.max(acc, axis=1)

    pool = jnp.concatenate([conv_pool(w1, b1), conv_pool(w2, b2)], axis=1)
    logits = jnp.dot(pool, fcw, precision='highest') + fcb[0, 0]
    return jax.nn.sigmoid(logits).reshape(-1)


if __name__ == "__main__":
    VOCAB = 50
    EMB = 32              # embedding_dim
    N_FILTERS = 8
    FILTER_SIZES = (3, 4)
    SEQ = 16
    BATCH = 2

    key = jax.random.PRNGKey(0)
    kv, k1, kb1, k2, kb2, kf, kfb, kx = jax.random.split(key, 8)

    vectors = jax.random.normal(kv, (VOCAB, EMB), jnp.float32)                   # emb table
    w1 = jax.random.normal(k1, (FILTER_SIZES[0], EMB, N_FILTERS), jnp.float32) * 0.1
    b1 = jax.random.normal(kb1, (1, N_FILTERS), jnp.float32) * 0.1
    w2 = jax.random.normal(k2, (FILTER_SIZES[1], EMB, N_FILTERS), jnp.float32) * 0.1
    b2 = jax.random.normal(kb2, (1, N_FILTERS), jnp.float32) * 0.1
    fcw = jax.random.normal(kf, (len(FILTER_SIZES) * N_FILTERS, 1), jnp.float32) * 0.1
    fcb = jax.random.normal(kfb, (1, 1), jnp.float32) * 0.1

    # Input token ids: (seq_len, batch), as the PyTorch forward expects (x.T inside)
    x = jax.random.randint(kx, (SEQ, BATCH), 0, VOCAB, jnp.int32)

    out = cnn_forward(x, vectors, w1, b1, w2, b2, fcw, fcb)
    out = jax.block_until_ready(out)
    assert out.shape == (BATCH,)

    # Loose check vs the full-f32 reference (kernel runs the MXU in bf16, single pass).
    ref_f32 = _reference_forward(x, vectors, w1, b1, w2, b2, fcw, fcb)
    assert jnp.allclose(out, ref_f32, atol=2e-2, rtol=2e-2), (out, ref_f32)

    # Tight check vs a reference whose embedding/conv weights are pre-rounded to bf16
    # (isolates kernel structure from the intended bf16 operand rounding).
    rb = lambda a: a.astype(jnp.bfloat16).astype(jnp.float32)
    ref_bf16 = _reference_forward(x, rb(vectors), rb(w1), b1, rb(w2), b2, fcw, fcb)
    assert jnp.allclose(out, ref_bf16, atol=1e-4, rtol=1e-4), (out, ref_bf16)

    print("KERNEL_OK")
</pallas_src>

<mosaic_0001>
module attributes {stable_mosaic.version = 11 : i64} {
  func.func @_cnn_kernel(%arg0: i32, %arg1: memref<192x1xi32, #tpu.memory_space<vmem>>, %arg2: memref<128x32xbf16, #tpu.memory_space<vmem>>, %arg3: memref<4x32x128xbf16, #tpu.memory_space<vmem>>, %arg4: memref<1x128xf32, #tpu.memory_space<vmem>>, %arg5: memref<1x128xf32, #tpu.memory_space<vmem>>, %arg6: memref<1x1xf32, #tpu.memory_space<smem>>, %arg7: memref<8x128xf32, #tpu.memory_space<vmem>>) attributes {dimension_semantics = [#tpu.dimension_semantics<parallel>], iteration_bounds = array<i64: 1>, scalar_prefetch = 0 : i64, scratch_operands = 0 : i64, tpu.core_type = #tpu.core_type<tc>, window_params = [{transform_indices = @transform_0, window_bounds = array<i64: 192, 1>}, {pipeline_mode = #tpu.pipeline_mode<synchronous>, transform_indices = @transform_1, window_bounds = array<i64: 128, 32>}, {pipeline_mode = #tpu.pipeline_mode<synchronous>, transform_indices = @transform_2, window_bounds = array<i64: 4, 32, 128>}, {pipeline_mode = #tpu.pipeline_mode<synchronous>, transform_indices = @transform_3, window_bounds = array<i64: 1, 128>}, {pipeline_mode = #tpu.pipeline_mode<synchronous>, transform_indices = @transform_4, window_bounds = array<i64: 1, 128>}, {transform_indices = @transform_5, window_bounds = array<i64: 1, 1>}, {transform_indices = @transform_6, window_bounds = array<i64: 8, 128>}]} {
    %c0 = arith.constant 0 : index
    %c0_0 = arith.constant 0 : index
    %0 = vector.load %arg1[%c0, %c0_0] : memref<192x1xi32, #tpu.memory_space<vmem>>, vector<192x1xi32>
    %1 = tpu.iota {dimensions = array<i32: 1>} : vector<192x128xi32>
    %2 = vector.broadcast %0 : vector<192x1xi32> to vector<192x128xi32>
    %3 = arith.cmpi eq, %1, %2 : vector<192x128xi32>
    %4 = arith.extui %3 : vector<192x128xi1> to vector<192x128xi32>
    %5 = arith.sitofp %4 : vector<192x128xi32> to vector<192x128xf32>
    %6 = arith.truncf %5 : vector<192x128xf32> to vector<192x128xbf16>
    %c0_1 = arith.constant 0 : index
    %c0_2 = arith.constant 0 : index
    %7 = vector.load %arg2[%c0_1, %c0_2] : memref<128x32xbf16, #tpu.memory_space<vmem>>, vector<128x32xbf16>
    %cst = arith.constant dense<0.000000e+00> : vector<192x32xf32>
    %8 = tpu.matmul %6, %7, %cst {dimension_numbers = #tpu.dot_dimension_numbers<[1], [0], [0], [1], [0, 0, 1, 1], [], []>} : vector<192x128xbf16>, vector<128x32xbf16>, vector<192x32xf32> -> vector<192x32xf32>
    %9 = vector.shape_cast %8 : vector<192x32xf32> to vector<8x24x32xf32>
    %cst_3 = arith.constant 0.000000e+00 : f32
    %10 = vector.broadcast %cst_3 : f32 to vector<128x128xf32>
    %11 = vector.extract_strided_slice %9 {offsets = [0, 0, 0], sizes = [8, 16, 32], strides = [1, 1, 1]} : vector<8x24x32xf32> to vector<8x16x32xf32>
    %12 = vector.shape_cast %11 : vector<8x16x32xf32> to vector<128x32xf32>
    %13 = arith.truncf %12 : vector<128x32xf32> to vector<128x32xbf16>
    %c0_4 = arith.constant 0 : index
    %c0_5 = arith.constant 0 : index
    %c0_6 = arith.constant 0 : index
    %14 = vector.load %arg3[%c0_4, %c0_5, %c0_6] : memref<4x32x128xbf16, #tpu.memory_space<vmem>>, vector<1x32x128xbf16>
    %15 = vector.shape_cast %14 : vector<1x32x128xbf16> to vector<32x128xbf16>
    %cst_7 = arith.constant dense<0.000000e+00> : vector<128x128xf32>
    %16 = tpu.matmul %13, %15, %cst_7 {dimension_numbers = #tpu.dot_dimension_numbers<[1], [0], [0], [1], [0, 0, 1, 1], [], []>} : vector<128x32xbf16>, vector<32x128xbf16>, vector<128x128xf32> -> vector<128x128xf32>
    %17 = arith.addf %10, %16 : vector<128x128xf32>
    %18 = vector.extract_strided_slice %9 {offsets = [0, 1, 0], sizes = [8, 16, 32], strides = [1, 1, 1]} : vector<8x24x32xf32> to vector<8x16x32xf32>
    %19 = vector.shape_cast %18 : vector<8x16x32xf32> to vector<128x32xf32>
    %20 = arith.truncf %19 : vector<128x32xf32> to vector<128x32xbf16>
    %c1 = arith.constant 1 : index
    %c0_8 = arith.constant 0 : index
    %c0_9 = arith.constant 0 : index
    %21 = vector.load %arg3[%c1, %c0_8, %c0_9] : memref<4x32x128xbf16, #tpu.memory_space<vmem>>, vector<1x32x128xbf16>
    %22 = vector.shape_cast %21 : vector<1x32x128xbf16> to vector<32x128xbf16>
    %cst_10 = arith.constant dense<0.000000e+00> : vector<128x128xf32>
    %23 = tpu.matmul %20, %22, %cst_10 {dimension_numbers = #tpu.dot_dimension_numbers<[1], [0], [0], [1], [0, 0, 1, 1], [], []>} : vector<128x32xbf16>, vector<32x128xbf16>, vector<128x128xf32> -> vector<128x128xf32>
    %24 = arith.addf %17, %23 : vector<128x128xf32>
    %25 = vector.extract_strided_slice %9 {offsets = [0, 2, 0], sizes = [8, 16, 32], strides = [1, 1, 1]} : vector<8x24x32xf32> to vector<8x16x32xf32>
    %26 = vector.shape_cast %25 : vector<8x16x32xf32> to vector<128x32xf32>
    %27 = arith.truncf %26 : vector<128x32xf32> to vector<128x32xbf16>
    %c2 = arith.constant 2 : index
    %c0_11 = arith.constant 0 : index
    %c0_12 = arith.constant 0 : index
    %28 = vector.load %arg3[%c2, %c0_11, %c0_12] : memref<4x32x128xbf16, #tpu.memory_space<vmem>>, vector<1x32x128xbf16>
    %29 = vector.shape_cast %28 : vector<1x32x128xbf16> to vector<32x128xbf16>
    %cst_13 = arith.constant dense<0.000000e+00> : vector<128x128xf32>
    %30 = tpu.matmul %27, %29, %cst_13 {dimension_numbers = #tpu.dot_dimension_numbers<[1], [0], [0], [1], [0, 0, 1, 1], [], []>} : vector<128x32xbf16>, vector<32x128xbf16>, vector<128x128xf32> -> vector<128x128xf32>
    %31 = arith.addf %24, %30 : vector<128x128xf32>
    %32 = vector.extract_strided_slice %9 {offsets = [0, 3, 0], sizes = [8, 16, 32], strides = [1, 1, 1]} : vector<8x24x32xf32> to vector<8x16x32xf32>
    %33 = vector.shape_cast %32 : vector<8x16x32xf32> to vector<128x32xf32>
    %34 = arith.truncf %33 : vector<128x32xf32> to vector<128x32xbf16>
    %c3 = arith.constant 3 : index
    %c0_14 = arith.constant 0 : index
    %c0_15 = arith.constant 0 : index
    %35 = vector.load %arg3[%c3, %c0_14, %c0_15] : memref<4x32x128xbf16, #tpu.memory_space<vmem>>, vector<1x32x128xbf16>
    %36 = vector.shape_cast %35 : vector<1x32x128xbf16> to vector<32x128xbf16>
    %cst_16 = arith.constant dense<0.000000e+00> : vector<128x128xf32>
    %37 = tpu.matmul %34, %36, %cst_16 {dimension_numbers = #tpu.dot_dimension_numbers<[1], [0], [0], [1], [0, 0, 1, 1], [], []>} : vector<128x32xbf16>, vector<32x128xbf16>, vector<128x128xf32> -> vector<128x128xf32>
    %38 = arith.addf %31, %37 : vector<128x128xf32>
    %c0_17 = arith.constant 0 : index
    %c0_18 = arith.constant 0 : index
    %39 = vector.load %arg4[%c0_17, %c0_18] : memref<1x128xf32, #tpu.memory_space<vmem>>, vector<1x128xf32>
    %40 = vector.broadcast %39 : vector<1x128xf32> to vector<128x128xf32>
    %41 = arith.addf %38, %40 : vector<128x128xf32>
    %cst_19 = arith.constant 0.000000e+00 : f32
    %42 = vector.broadcast %cst_19 : f32 to vector<128x128xf32>
    %43 = arith.maximumf %41, %42 : vector<128x128xf32>
    %44 = vector.shape_cast %43 : vector<128x128xf32> to vector<8x16x128xf32>
    %45 = tpu.iota {dimensions = array<i32: 1>} : vector<8x16x128xi32>
    %46 = tpu.iota {dimensions = array<i32: 2>} : vector<8x16x128xi32>
    %c8_i32 = arith.constant 8 : i32
    %47 = vector.broadcast %c8_i32 : i32 to vector<8x16x128xi32>
    %48 = arith.cmpi slt, %46, %47 : vector<8x16x128xi32>
    %c14_i32 = arith.constant 14 : i32
    %c13_i32 = arith.constant 13 : i32
    %49 = vector.broadcast %c14_i32 : i32 to vector<8x16x128xi32>
    %50 = vector.broadcast %c13_i32 : i32 to vector<8x16x128xi32>
    %51 = arith.select %48, %49, %50 : vector<8x16x128xi1>, vector<8x16x128xi32>
    %52 = arith.cmpi slt, %45, %51 : vector<8x16x128xi32>
    %cst_20 = arith.constant 0.000000e+00 : f32
    %53 = vector.broadcast %cst_20 : f32 to vector<8x16x128xf32>
    %54 = arith.select %52, %44, %53 : vector<8x16x128xi1>, vector<8x16x128xf32>
    %cst_21 = arith.constant dense<0xFF800000> : vector<8x128xf32>
    %55 = vector.multi_reduction <maximumf>, %54, %cst_21 [1] : vector<8x16x128xf32> to vector<8x128xf32>
    %c0_22 = arith.constant 0 : index
    %c0_23 = arith.constant 0 : index
    %56 = vector.load %arg5[%c0_22, %c0_23] : memref<1x128xf32, #tpu.memory_space<vmem>>, vector<1x128xf32>
    %57 = vector.broadcast %56 : vector<1x128xf32> to vector<8x128xf32>
    %58 = arith.mulf %55, %57 : vector<8x128xf32>
    %cst_24 = arith.constant dense<0.000000e+00> : vector<8xf32>
    %59 = vector.multi_reduction <add>, %58, %cst_24 [1] : vector<8x128xf32> to vector<8xf32>
    %60 = vector.shape_cast %59 : vector<8xf32> to vector<8x1xf32>
    %c0_25 = arith.constant 0 : index
    %c0_26 = arith.constant 0 : index
    %61 = memref.load %arg6[%c0_25, %c0_26] : memref<1x1xf32, #tpu.memory_space<smem>>
    %62 = vector.broadcast %61 : f32 to vector<8x1xf32>
    %63 = arith.addf %60, %62 : vector<8x1xf32>
    %64 = arith.negf %63 : vector<8x1xf32>
    %65 = math.exp %64 : vector<8x1xf32>
    %cst_27 = arith.constant 1.000000e+00 : f32
    %66 = vector.broadcast %cst_27 : f32 to vector<8x1xf32>
    %67 = arith.addf %66, %65 : vector<8x1xf32>
    %68 = arith.divf %66, %67 : vector<8x1xf32>
    %69 = vector.shape_cast %68 : vector<8x1xf32> to vector<8x1xf32>
    %70 = vector.broadcast %69 : vector<8x1xf32> to vector<8x128xf32>
    %c0_28 = arith.constant 0 : index
    %c0_29 = arith.constant 0 : index
    %71 = vector.load %arg7[%c0_28, %c0_29] : memref<8x128xf32, #tpu.memory_space<vmem>>, vector<8x128xf32>
    tpu.vector_store %arg7[%c0_28, %c0_29], %70 {strides = array<i32>} : memref<8x128xf32, #tpu.memory_space<vmem>>, vector<8x128xf32>,
    return
  }
  func.func @transform_0(%arg0: i32) -> (i32, i32) {
    %c0_i32 = arith.constant 0 : i32
    %c0_i32_0 = arith.constant 0 : i32
    return %arg0, %c0_i32 : i32, i32
  }
  func.func @transform_1(%arg0: i32) -> (i32, i32) {
    %c0_i32 = arith.constant 0 : i32
    %c0_i32_0 = arith.constant 0 : i32
    %c0_i32_1 = arith.constant 0 : i32
    return %c0_i32, %c0_i32_0 : i32, i32
  }
  func.func @transform_2(%arg0: i32) -> (i32, i32, i32) {
    %c0_i32 = arith.constant 0 : i32
    %c0_i32_0 = arith.constant 0 : i32
    %c0_i32_1 = arith.constant 0 : i32
    %c0_i32_2 = arith.constant 0 : i32
    return %c0_i32, %c0_i32_0, %c0_i32_1 : i32, i32, i32
  }
  func.func @transform_3(%arg0: i32) -> (i32, i32) {
    %c0_i32 = arith.constant 0 : i32
    %c0_i32_0 = arith.constant 0 : i32
    %c0_i32_1 = arith.constant 0 : i32
    return %c0_i32, %c0_i32_0 : i32, i32
  }
  func.func @transform_4(%arg0: i32) -> (i32, i32) {
    %c0_i32 = arith.constant 0 : i32
    %c0_i32_0 = arith.constant 0 : i32
    %c0_i32_1 = arith.constant 0 : i32
    return %c0_i32, %c0_i32_0 : i32, i32
  }
  func.func @transform_5(%arg0: i32) -> (i32, i32) {
    %c0_i32 = arith.constant 0 : i32
    %c0_i32_0 = arith.constant 0 : i32
    %c0_i32_1 = arith.constant 0 : i32
    return %c0_i32, %c0_i32_0 : i32, i32
  }
  func.func @transform_6(%arg0: i32) -> (i32, i32) {
    %c0_i32 = arith.constant 0 : i32
    %c0_i32_0 = arith.constant 0 : i32
    return %arg0, %c0_i32 : i32, i32
  }
}

module attributes {stable_mosaic.version = 11 : i64} {
  func.func @_cnn_kernel(%arg0: i32, %arg1: memref<192x1xi32, #tpu.memory_space<vmem>>, %arg2: memref<128x32xbf16, #tpu.memory_space<vmem>>, %arg3: memref<4x32x128xbf16, #tpu.memory_space<vmem>>, %arg4: memref<1x128xf32, #tpu.memory_space<vmem>>, %arg5: memref<1x128xf32, #tpu.memory_space<vmem>>, %arg6: memref<1x1xf32, #tpu.memory_space<smem>>, %arg7: memref<8x128xf32, #tpu.memory_space<vmem>>) attributes {dimension_semantics = [#tpu.dimension_semantics<parallel>], iteration_bounds = array<i64: 1>, scalar_prefetch = 0 : i64, scratch_operands = 0 : i64, tpu.core_type = #tpu.core_type<tc>, window_params = [{transform_indices = @transform_0, window_bounds = array<i64: 192, 1>}, {pipeline_mode = #tpu.pipeline_mode<synchronous>, transform_indices = @transform_1, window_bounds = array<i64: 128, 32>}, {pipeline_mode = #tpu.pipeline_mode<synchronous>, transform_indices = @transform_2, window_bounds = array<i64: 4, 32, 128>}, {pipeline_mode = #tpu.pipeline_mode<synchronous>, transform_indices = @transform_3, window_bounds = array<i64: 1, 128>}, {pipeline_mode = #tpu.pipeline_mode<synchronous>, transform_indices = @transform_4, window_bounds = array<i64: 1, 128>}, {transform_indices = @transform_5, window_bounds = array<i64: 1, 1>}, {transform_indices = @transform_6, window_bounds = array<i64: 8, 128>}]} {
    %c0 = arith.constant 0 : index
    %c0_0 = arith.constant 0 : index
    %0 = vector.load %arg1[%c0, %c0_0] : memref<192x1xi32, #tpu.memory_space<vmem>>, vector<192x1xi32>
    %1 = tpu.iota {dimensions = array<i32: 1>} : vector<192x128xi32>
    %2 = vector.broadcast %0 : vector<192x1xi32> to vector<192x128xi32>
    %3 = arith.cmpi eq, %1, %2 : vector<192x128xi32>
    %4 = arith.extui %3 : vector<192x128xi1> to vector<192x128xi32>
    %5 = arith.sitofp %4 : vector<192x128xi32> to vector<192x128xf32>
    %6 = arith.truncf %5 : vector<192x128xf32> to vector<192x128xbf16>
    %c0_1 = arith.constant 0 : index
    %c0_2 = arith.constant 0 : index
    %7 = vector.load %arg2[%c0_1, %c0_2] : memref<128x32xbf16, #tpu.memory_space<vmem>>, vector<128x32xbf16>
    %cst = arith.constant dense<0.000000e+00> : vector<192x32xf32>
    %8 = tpu.matmul %6, %7, %cst {dimension_numbers = #tpu.dot_dimension_numbers<[1], [0], [0], [1], [0, 0, 1, 1], [], []>} : vector<192x128xbf16>, vector<128x32xbf16>, vector<192x32xf32> -> vector<192x32xf32>
    %9 = vector.shape_cast %8 : vector<192x32xf32> to vector<8x24x32xf32>
    %cst_3 = arith.constant 0.000000e+00 : f32
    %10 = vector.broadcast %cst_3 : f32 to vector<128x128xf32>
    %11 = vector.extract_strided_slice %9 {offsets = [0, 0, 0], sizes = [8, 16, 32], strides = [1, 1, 1]} : vector<8x24x32xf32> to vector<8x16x32xf32>
    %12 = vector.shape_cast %11 : vector<8x16x32xf32> to vector<128x32xf32>
    %13 = arith.truncf %12 : vector<128x32xf32> to vector<128x32xbf16>
    %c0_4 = arith.constant 0 : index
    %c0_5 = arith.constant 0 : index
    %c0_6 = arith.constant 0 : index
    %14 = vector.load %arg3[%c0_4, %c0_5, %c0_6] : memref<4x32x128xbf16, #tpu.memory_space<vmem>>, vector<1x32x128xbf16>
    %15 = vector.shape_cast %14 : vector<1x32x128xbf16> to vector<32x128xbf16>
    %cst_7 = arith.constant dense<0.000000e+00> : vector<128x128xf32>
    %16 = tpu.matmul %13, %15, %cst_7 {dimension_numbers = #tpu.dot_dimension_numbers<[1], [0], [0], [1], [0, 0, 1, 1], [], []>} : vector<128x32xbf16>, vector<32x128xbf16>, vector<128x128xf32> -> vector<128x128xf32>
    %17 = arith.addf %10, %16 : vector<128x128xf32>
    %18 = vector.extract_strided_slice %9 {offsets = [0, 1, 0], sizes = [8, 16, 32], strides = [1, 1, 1]} : vector<8x24x32xf32> to vector<8x16x32xf32>
    %19 = vector.shape_cast %18 : vector<8x16x32xf32> to vector<128x32xf32>
    %20 = arith.truncf %19 : vector<128x32xf32> to vector<128x32xbf16>
    %c1 = arith.constant 1 : index
    %c0_8 = arith.constant 0 : index
    %c0_9 = arith.constant 0 : index
    %21 = vector.load %arg3[%c1, %c0_8, %c0_9] : memref<4x32x128xbf16, #tpu.memory_space<vmem>>, vector<1x32x128xbf16>
    %22 = vector.shape_cast %21 : vector<1x32x128xbf16> to vector<32x128xbf16>
    %cst_10 = arith.constant dense<0.000000e+00> : vector<128x128xf32>
    %23 = tpu.matmul %20, %22, %cst_10 {dimension_numbers = #tpu.dot_dimension_numbers<[1], [0], [0], [1], [0, 0, 1, 1], [], []>} : vector<128x32xbf16>, vector<32x128xbf16>, vector<128x128xf32> -> vector<128x128xf32>
    %24 = arith.addf %17, %23 : vector<128x128xf32>
    %25 = vector.extract_strided_slice %9 {offsets = [0, 2, 0], sizes = [8, 16, 32], strides = [1, 1, 1]} : vector<8x24x32xf32> to vector<8x16x32xf32>
    %26 = vector.shape_cast %25 : vector<8x16x32xf32> to vector<128x32xf32>
    %27 = arith.truncf %26 : vector<128x32xf32> to vector<128x32xbf16>
    %c2 = arith.constant 2 : index
    %c0_11 = arith.constant 0 : index
    %c0_12 = arith.constant 0 : index
    %28 = vector.load %arg3[%c2, %c0_11, %c0_12] : memref<4x32x128xbf16, #tpu.memory_space<vmem>>, vector<1x32x128xbf16>
    %29 = vector.shape_cast %28 : vector<1x32x128xbf16> to vector<32x128xbf16>
    %cst_13 = arith.constant dense<0.000000e+00> : vector<128x128xf32>
    %30 = tpu.matmul %27, %29, %cst_13 {dimension_numbers = #tpu.dot_dimension_numbers<[1], [0], [0], [1], [0, 0, 1, 1], [], []>} : vector<128x32xbf16>, vector<32x128xbf16>, vector<128x128xf32> -> vector<128x128xf32>
    %31 = arith.addf %24, %30 : vector<128x128xf32>
    %32 = vector.extract_strided_slice %9 {offsets = [0, 3, 0], sizes = [8, 16, 32], strides = [1, 1, 1]} : vector<8x24x32xf32> to vector<8x16x32xf32>
    %33 = vector.shape_cast %32 : vector<8x16x32xf32> to vector<128x32xf32>
    %34 = arith.truncf %33 : vector<128x32xf32> to vector<128x32xbf16>
    %c3 = arith.constant 3 : index
    %c0_14 = arith.constant 0 : index
    %c0_15 = arith.constant 0 : index
    %35 = vector.load %arg3[%c3, %c0_14, %c0_15] : memref<4x32x128xbf16, #tpu.memory_space<vmem>>, vector<1x32x128xbf16>
    %36 = vector.shape_cast %35 : vector<1x32x128xbf16> to vector<32x128xbf16>
    %cst_16 = arith.constant dense<0.000000e+00> : vector<128x128xf32>
    %37 = tpu.matmul %34, %36, %cst_16 {dimension_numbers = #tpu.dot_dimension_numbers<[1], [0], [0], [1], [0, 0, 1, 1], [], []>} : vector<128x32xbf16>, vector<32x128xbf16>, vector<128x128xf32> -> vector<128x128xf32>
    %38 = arith.addf %31, %37 : vector<128x128xf32>
    %c0_17 = arith.constant 0 : index
    %c0_18 = arith.constant 0 : index
    %39 = vector.load %arg4[%c0_17, %c0_18] : memref<1x128xf32, #tpu.memory_space<vmem>>, vector<1x128xf32>
    %40 = vector.broadcast %39 : vector<1x128xf32> to vector<128x128xf32>
    %41 = arith.addf %38, %40 : vector<128x128xf32>
    %cst_19 = arith.constant 0.000000e+00 : f32
    %42 = vector.broadcast %cst_19 : f32 to vector<128x128xf32>
    %43 = arith.maximumf %41, %42 : vector<128x128xf32>
    %44 = vector.shape_cast %43 : vector<128x128xf32> to vector<8x16x128xf32>
    %45 = tpu.iota {dimensions = array<i32: 1>} : vector<8x16x128xi32>
    %46 = tpu.iota {dimensions = array<i32: 2>} : vector<8x16x128xi32>
    %c8_i32 = arith.constant 8 : i32
    %47 = vector.broadcast %c8_i32 : i32 to vector<8x16x128xi32>
    %48 = arith.cmpi slt, %46, %47 : vector<8x16x128xi32>
    %c14_i32 = arith.constant 14 : i32
    %c13_i32 = arith.constant 13 : i32
    %49 = vector.broadcast %c14_i32 : i32 to vector<8x16x128xi32>
    %50 = vector.broadcast %c13_i32 : i32 to vector<8x16x128xi32>
    %51 = arith.select %48, %49, %50 : vector<8x16x128xi1>, vector<8x16x128xi32>
    %52 = arith.cmpi slt, %45, %51 : vector<8x16x128xi32>
    %cst_20 = arith.constant 0.000000e+00 : f32
    %53 = vector.broadcast %cst_20 : f32 to vector<8x16x128xf32>
    %54 = arith.select %52, %44, %53 : vector<8x16x128xi1>, vector<8x16x128xf32>
    %cst_21 = arith.constant dense<0xFF800000> : vector<8x128xf32>
    %55 = vector.multi_reduction <maximumf>, %54, %cst_21 [1] : vector<8x16x128xf32> to vector<8x128xf32>
    %c0_22 = arith.constant 0 : index
    %c0_23 = arith.constant 0 : index
    %56 = vector.load %arg5[%c0_22, %c0_23] : memref<1x128xf32, #tpu.memory_space<vmem>>, vector<1x128xf32>
    %57 = vector.broadcast %56 : vector<1x128xf32> to vector<8x128xf32>
    %58 = arith.mulf %55, %57 : vector<8x128xf32>
    %cst_24 = arith.constant dense<0.000000e+00> : vector<8xf32>
    %59 = vector.multi_reduction <add>, %58, %cst_24 [1] : vector<8x128xf32> to vector<8xf32>
    %60 = vector.shape_cast %59 : vector<8xf32> to vector<8x1xf32>
    %c0_25 = arith.constant 0 : index
    %c0_26 = arith.constant 0 : index
    %61 = memref.load %arg6[%c0_25, %c0_26] : memref<1x1xf32, #tpu.memory_space<smem>>
    %62 = vector.broadcast %61 : f32 to vector<8x1xf32>
    %63 = arith.addf %60, %62 : vector<8x1xf32>
    %64 = arith.negf %63 : vector<8x1xf32>
    %65 = math.exp %64 : vector<8x1xf32>
    %cst_27 = arith.constant 1.000000e+00 : f32
    %66 = vector.broadcast %cst_27 : f32 to vector<8x1xf32>
    %67 = arith.addf %66, %65 : vector<8x1xf32>
    %68 = arith.divf %66, %67 : vector<8x1xf32>
    %69 = vector.shape_cast %68 : vector<8x1xf32> to vector<8x1xf32>
    %70 = vector.broadcast %69 : vector<8x1xf32> to vector<8x128xf32>
    %c0_28 = arith.constant 0 : index
    %c0_29 = arith.constant 0 : index
    %71 = vector.load %arg7[%c0_28, %c0_29] : memref<8x128xf32, #tpu.memory_space<vmem>>, vector<8x128xf32>
    tpu.vector_store %arg7[%c0_28, %c0_29], %70 {strides = array<i32>} : memref<8x128xf32, #tpu.memory_space<vmem>>, vector<8x128xf32>,
    return
  }
  func.func @transform_0(%arg0: i32) -> (i32, i32) {
    %c0_i32 = arith.constant 0 : i32
    %c0_i32_0 = arith.constant 0 : i32
    return %arg0, %c0_i32 : i32, i32
  }
  func.func @transform_1(%arg0: i32) -> (i32, i32) {
    %c0_i32 = arith.constant 0 : i32
    %c0_i32_0 = arith.constant 0 : i32
    %c0_i32_1 = arith.constant 0 : i32
    return %c0_i32, %c0_i32_0 : i32, i32
  }
  func.func @transform_2(%arg0: i32) -> (i32, i32, i32) {
    %c0_i32 = arith.constant 0 : i32
    %c0_i32_0 = arith.constant 0 : i32
    %c0_i32_1 = arith.constant 0 : i32
    %c0_i32_2 = arith.constant 0 : i32
    return %c0_i32, %c0_i32_0, %c0_i32_1 : i32, i32, i32
  }
  func.func @transform_3(%arg0: i32) -> (i32, i32) {
    %c0_i32 = arith.constant 0 : i32
    %c0_i32_0 = arith.constant 0 : i32
    %c0_i32_1 = arith.constant 0 : i32
    return %c0_i32, %c0_i32_0 : i32, i32
  }
  func.func @transform_4(%arg0: i32) -> (i32, i32) {
    %c0_i32 = arith.constant 0 : i32
    %c0_i32_0 = arith.constant 0 : i32
    %c0_i32_1 = arith.constant 0 : i32
    return %c0_i32, %c0_i32_0 : i32, i32
  }
  func.func @transform_5(%arg0: i32) -> (i32, i32) {
    %c0_i32 = arith.constant 0 : i32
    %c0_i32_0 = arith.constant 0 : i32
    %c0_i32_1 = arith.constant 0 : i32
    return %c0_i32, %c0_i32_0 : i32, i32
  }
  func.func @transform_6(%arg0: i32) -> (i32, i32) {
    %c0_i32 = arith.constant 0 : i32
    %c0_i32_0 = arith.constant 0 : i32
    return %arg0, %c0_i32 : i32, i32
  }
}

</mosaic_0001>

<bundles_post_ra>
// kernel: tpu_custom_call.1
= control target key start
LH: loop header
LB: loop body
LE: loop exit
PB: predicated region body
PF: predicated region fallthrough
CT: control target
= control target key end

     0   :  { %v1790_v2 = vmov 0   ;;  %s2244_s0 = inlined_call_operand.vmem [shape: s32[192,1], index: 0, kind: input, shape index: {}]   ;;  %s2245_s1 = inlined_call_operand.vmem [shape: bf16[128,32], index: 1, kind: input, shape index: {}]   ;;  %s2246_s2 = inlined_call_operand.vmem [shape: bf16[4,32,128], index: 2, kind: input, shape index: {}]   ;;  %s2247_s3 = inlined_call_operand.vmem [shape: f32[1,128], index: 3, kind: input, shape index: {}]   ;;  %s2248_s4 = inlined_call_operand.vmem [shape: f32[1,128], index: 4, kind: input, shape index: {}]   ;;  %s2249_s5 = inlined_call_operand.<no memory space> [shape: f32[1,1], index: 5, kind: input, shape index: {}]   ;;  %s2250_s6 = inlined_call_operand.hbm [shape: f32[8,128], index: 6, kind: output, shape index: {}]  }
   0x1   :  { %v28_v0 = vld [vmem:[%s2244_s0 + $0x10] sm:$0xff]  ;;  %v26_v1 = vld [vmem:[%s2244_s0] sm:$0xff]  ;;  %1745 = vset.pattern.permute.xlu1 %v1790_v2  ;;  %1744 = vset.pattern.permute.xlu0 %v1790_v2  ;;  %v29_v3 = vld [vmem:[%s2244_s0 + $0x18] sm:$0xff] }
   0x2   :  { %59 = vperm.xlu1 %1745, %v28_v0   ;;  %53 = vperm.xlu0 %1744, %v26_v1   ;;  %v27_v4 = vld [vmem:[%s2244_s0 + $0x8] sm:$0xff]  ;;  %v30_v6 = vld [vmem:[%s2244_s0 + $0x20] sm:$0xff]  ;;  %v33_v9 = vld [vmem:[%s2244_s0 + $0x38] sm:$0xff] }
   0x3   :  { %v31_v5 = vld [vmem:[%s2244_s0 + $0x28] sm:$0xff]  ;;  %v1746_v7 = vld [vmem:[%s2245_s1] sm:$0xff]   ;;  %v32_v10 = vld [vmem:[%s2244_s0 + $0x30] sm:$0xff] }
   0x4   :  { %v1747_v8 = vld [vmem:[%s2245_s1 + $0x8] sm:$0xff]   ;;  %1572 = vmatprep.subr.bf16.mxu0 %v1746_v7  ;;  %v1748_v11 = vld [vmem:[%s2245_s1 + $0x10] sm:$0xff]   ;;  %v34_v13 = vld [vmem:[%s2244_s0 + $0x40] sm:$0xff] }
   0x5   :  { %1573 = vmatpush3.bf16.msra.mxu0 %v1746_v7  ;;  %v35_v12 = vld [vmem:[%s2244_s0 + $0x48] sm:$0xff]  ;;  %v1749_v14 = vld [vmem:[%s2245_s1 + $0x18] sm:$0xff]   ;;  %v36_v16 = vld [vmem:[%s2244_s0 + $0x50] sm:$0xff] }
   0x6   :  { %62 = vperm.xlu1 %1745, %v29_v3   ;;  %56 = vperm.xlu0 %1744, %v27_v4   ;;  %v37_v15 = vld [vmem:[%s2244_s0 + $0x58] sm:$0xff]  ;;  %v1750_v17 = vld [vmem:[%s2245_s1 + $0x20] sm:$0xff]  }
   0x7   :  { %1574 = vmatprep.subr.bf16.mxu0 %v1747_v8 }
   0x9   :  { %1575 = vmatpush3.bf16.msra.mxu0 %v1747_v8 }
   0xa   :  { %68 = vperm.xlu1 %1745, %v31_v5   ;;  %65 = vperm.xlu0 %1744, %v30_v6  }
   0xb   :  { %1576 = vmatprep.subr.bf16.mxu0 %v1748_v11 }
   0xd   :  { %1577 = vmatpush3.bf16.msra.mxu0 %v1748_v11 }
   0xe   :  { %74 = vperm.xlu1 %1745, %v33_v9   ;;  %71 = vperm.xlu0 %1744, %v32_v10  }
   0xf   :  { %1578 = vmatprep.subr.bf16.mxu0 %v1749_v14 }
  0x12   :  { %80 = vperm.xlu1 %1745, %v35_v12   ;;  %77 = vperm.xlu0 %1744, %v34_v13  }
  0x13   :  { %12 = vsyncpa [#allocation4], 0  ;;  %v39_v18 = vld [vmem:[%s2244_s0 + $0x68] sm:$0xff]  ;;  %v38_v19 = vld [vmem:[%s2244_s0 + $0x60] sm:$0xff]  ;;  %1579 = vmatpush3.bf16.msra.mxu0 %v1749_v14  ;;  %v50_v33 = vlaneseq  ;;  %v1791_v39 = vmov 1.0|1.0  }
  0x14   :  { %1580 = vmatprep.subr.bf16.mxu0 %v1750_v17  ;;  %v1751_v20 = vld [vmem:[%s2245_s1 + $0x28] sm:$0xff]   ;;  %v41_v21 = vld [vmem:[%s2244_s0 + $0x78] sm:$0xff]  ;;  %v40_v22 = vld [vmem:[%s2244_s0 + $0x70] sm:$0xff]  ;;  %s1793_s30 = smov [#allocation3]  }
  0x15   :  { %v1752_v23 = vld [vmem:[%s2245_s1 + $0x30] sm:$0xff]   ;;  %v43_v24 = vld [vmem:[%s2244_s0 + $0x88] sm:$0xff]  ;;  %v42_v25 = vld [vmem:[%s2244_s0 + $0x80] sm:$0xff]  ;;  %v1926_v36 = vand.u32 127, %v50_v33  ;;  %s1393_s7 = sshll.u32 %s1793_s30, 4  ;;  %s1394_s7 = int_to_ptr.vmem [resolvable:$true] %s1393_s7 }
  0x16   :  { %86 = vperm.xlu1 %1745, %v37_v15   ;;  %83 = vperm.xlu0 %1744, %v36_v16   ;;  %v1753_v26 = vld [vmem:[%s2245_s1 + $0x38] sm:$0xff]   ;;  %v44_v28 = vld [vmem:[%s2244_s0 + $0x90] sm:$0xff]  ;;  %v47_v29 = vld [vmem:[%s2244_s0 + $0xa8] sm:$0xff]  ;;  %s1766_s1 = scalar_lea.vmem %s1394_s7, 128  ;;  %p1771_p1 = scmp.lt.s32.totalorder %s1394_s7, %s1394_s7 }
  0x17   :  { %1581 = vmatpush3.bf16.msra.mxu0 %v1750_v17  ;;  %v45_v27 = vld [vmem:[%s2244_s0 + $0x98] sm:$0xff]  ;;  %v46_v30 = vld [vmem:[%s2244_s0 + $0xa0] sm:$0xff]  ;;  %v48_v32 = vld [vmem:[%s2244_s0 + $0xb0] sm:$0xff]  ;;  %p1767_p0 = scmp.ne.s32.totalorder %s1394_s7, %s1766_s1  ;;  %p1772_p2 = scmp.lt.s32.totalorder %s1766_s1, %s1766_s1 }
  0x18   :  { %1582 = vmatprep.subr.bf16.mxu0 %v1751_v20  ;;  %v49_v31 = vld [vmem:[%s2244_s0 + $0xb8] sm:$0xff]  ;;  %v1754_v60 = vld [vmem:[%s2246_s2] sm:$0xff]   ;;  %v1755_v61 = vld [vmem:[%s2246_s2 + $0x8] sm:$0xff]  }
  0x19   :  { %1632 = vmatprep.subr.bf16.mxu1 %v1754_v60  ;;  %v1756_v62 = vld [vmem:[%s2246_s2 + $0x10] sm:$0xff]   ;;  %v1757_v63 = vld [vmem:[%s2246_s2 + $0x18] sm:$0xff]   ;;  %v1758_v0 = vld [vmem:[%s2246_s2 + $0x20] sm:$0xff]   ;;  %p1773_p3 = por %p1772_p2, %p1771_p1 }
  0x1a   :  { %92 = vperm.xlu1 %1745, %v39_v18   ;;  %89 = vperm.xlu0 %1744, %v38_v19  }
  0x1b   :  { %1583 = vmatpush3.bf16.msra.mxu0 %v1751_v20  ;;  %1633 = vmatpush3.bf16.msra.mxu1 %v1754_v60  ;;  %p1774_p4 = pnand %p1773_p3, %p1767_p0 }
  0x1c   :  { %1584 = vmatprep.subr.bf16.mxu0 %v1752_v23  ;;  %1634 = vmatprep.subr.bf16.mxu1 %v1755_v61 }
  0x1e   :  { %98 = vperm.xlu1 %1745, %v41_v21   ;;  %95 = vperm.xlu0 %1744, %v40_v22  }
  0x1f   :  { %1585 = vmatpush3.bf16.msra.mxu0 %v1752_v23  ;;  %1635 = vmatpush3.bf16.msra.mxu1 %v1755_v61 }
  0x20   :  { %1586 = vmatprep.subr.bf16.mxu0 %v1753_v26  ;;  %1652 = vmatprep.subr.bf16.mxu1 %v1758_v0 }
  0x22   :  { %104 = vperm.xlu1 %1745, %v43_v24   ;;  %101 = vperm.xlu0 %1744, %v42_v25  }
  0x23   :  { %1587 = vmatpush3.bf16.msra.mxu0 %v1753_v26 }
  0x24   :  { %1612 = vmatprep.subr.bf16.mxu0 %v1756_v62 }
  0x26   :  { %110 = vperm.xlu1 %1745, %v45_v27   ;;  %107 = vperm.xlu0 %1744, %v44_v28  }
  0x2a   :  { %116 = vperm.xlu1 %1745, %v47_v29   ;;  %113 = vperm.xlu0 %1744, %v46_v30  }
  0x2e   :  { %122 = vperm.xlu1 %1745, %v49_v31   ;;  %119 = vperm.xlu0 %1744, %v48_v32  }
  0x81   :  { %v60_v34 = vpop.permute.xlu1 %59  ;;  %v54_v35 = vpop.permute.xlu0 %53 }
  0x82   :  { %vm126_vm0 = vcmp.eq.s32.totalorder %v1926_v36, %v60_v34  ;;  %vm124_vm3 = vcmp.eq.s32.totalorder %v1926_v36, %v54_v35 }
  0x85   :  { %v63_v37 = vpop.permute.xlu1 %62  ;;  %v57_v38 = vpop.permute.xlu0 %56 }
  0x86   :  { %vm127_vm1 = vcmp.eq.s32.totalorder %v1926_v36, %v63_v37  ;;  %vm125_vm2 = vcmp.eq.s32.totalorder %v1926_v36, %v57_v38 }
  0x87   :  { %vm1435_vm4 = vmpackc.low %vm127_vm1, %vm126_vm0 }
  0x88   :  { %vm1433_vm5 = vmpackc.low %vm125_vm2, %vm124_vm3 }
  0x89   :  { %1588 = vmatprep.mubr.msk.bf16.mxu0 %vm1433_vm5, %v1791_v39  ;;  %v69_v40 = vpop.permute.xlu1 %68  ;;  %v66_v41 = vpop.permute.xlu0 %65 }
  0x8a   :  { %vm129_vm6 = vcmp.eq.s32.totalorder %v1926_v36, %v69_v40  ;;  %1589 = vmatmul.mubr.msk.bf16.vlgmr.msra.gmra.mrb[0].mxu0 %vm1435_vm4, %v1791_v39  ;;  %vm128_vm7 = vcmp.eq.s32.totalorder %v1926_v36, %v66_v41 }
  0x8b   :  { %vm1437_vm8 = vmpackc.low %vm129_vm6, %vm128_vm7  ;;  %1613 = vmatpush3.bf16.msra.mxu0 %v1756_v62 }
  0x8c   :  { %1592 = vmatprep.mubr.msk.bf16.mxu0 %vm1437_vm8, %v1791_v39  ;;  %1614 = vmatprep.subr.bf16.mxu0 %v1757_v63 }
  0x8d   :  { %v75_v42 = vpop.permute.xlu1 %74  ;;  %v72_v43 = vpop.permute.xlu0 %71 }
  0x8e   :  { %vm131_vm9 = vcmp.eq.s32.totalorder %v1926_v36, %v75_v42  ;;  %vm130_vm10 = vcmp.eq.s32.totalorder %v1926_v36, %v72_v43 }
  0x8f   :  { %vm1439_vm11 = vmpackc.low %vm131_vm9, %vm130_vm10  ;;  %1615 = vmatpush3.bf16.msra.mxu0 %v1757_v63 }
  0x91   :  { %v81_v44 = vpop.permute.xlu1 %80  ;;  %v78_v45 = vpop.permute.xlu0 %77 }
  0x92   :  { %vm133_vm12 = vcmp.eq.s32.totalorder %v1926_v36, %v81_v44  ;;  %1593 = vmatmul.mubr.msk.bf16.gmra.mrb[4].mxu0 %vm1439_vm11, %v1791_v39  ;;  %vm132_vm13 = vcmp.eq.s32.totalorder %v1926_v36, %v78_v45 }
  0x93   :  { %vm1441_vm14 = vmpackc.low %vm133_vm12, %vm132_vm13 }
  0x94   :  { %1596 = vmatprep.mubr.msk.bf16.mxu0 %vm1441_vm14, %v1791_v39 }
  0x95   :  { %v87_v46 = vpop.permute.xlu1 %86  ;;  %v84_v47 = vpop.permute.xlu0 %83 }
  0x96   :  { %vm135_vm15 = vcmp.eq.s32.totalorder %v1926_v36, %v87_v46  ;;  %vm134_vm0 = vcmp.eq.s32.totalorder %v1926_v36, %v84_v47 }
  0x97   :  { %vm1443_vm1 = vmpackc.low %vm135_vm15, %vm134_vm0 }
  0x99   :  { %v93_v48 = vpop.permute.xlu1 %92  ;;  %v90_v49 = vpop.permute.xlu0 %89 }
  0x9a   :  { %vm137_vm2 = vcmp.eq.s32.totalorder %v1926_v36, %v93_v48  ;;  %1597 = vmatmul.mubr.msk.bf16.gmra.mrb[8].mxu0 %vm1443_vm1, %v1791_v39  ;;  %vm136_vm3 = vcmp.eq.s32.totalorder %v1926_v36, %v90_v49 }
  0x9b   :  { %vm1445_vm4 = vmpackc.low %vm137_vm2, %vm136_vm3 }
  0x9c   :  { %1600 = vmatprep.mubr.msk.bf16.mxu0 %vm1445_vm4, %v1791_v39  ;;  %vm519_vm4 = vcmask 261120  }
  0x9d   :  { %v99_v50 = vpop.permute.xlu1 %98  ;;  %v96_v51 = vpop.permute.xlu0 %95 }
  0x9e   :  { %vm139_vm5 = vcmp.eq.s32.totalorder %v1926_v36, %v99_v50  ;;  %vm138_vm6 = vcmp.eq.s32.totalorder %v1926_v36, %v96_v51 }
  0x9f   :  { %vm1447_vm7 = vmpackc.low %vm139_vm5, %vm138_vm6  ;;  %vm437_vm5 = vcmask 1046528   ;;  %vm774_vm6 = vcmask 1045504  }
  0xa1   :  { %v105_v52 = vpop.permute.xlu1 %104  ;;  %v102_v53 = vpop.permute.xlu0 %101 }
  0xa2   :  { %vm141_vm8 = vcmp.eq.s32.totalorder %v1926_v36, %v105_v52  ;;  %1601 = vmatmul.mubr.msk.bf16.gmra.mrb[12].mxu0 %vm1447_vm7, %v1791_v39  ;;  %vm140_vm9 = vcmp.eq.s32.totalorder %v1926_v36, %v102_v53  ;;  %vm993_vm7 = vcmask 1044480  }
  0xa3   :  { %vm1449_vm10 = vmpackc.low %vm141_vm8, %vm140_vm9  ;;  %vm1254_vm8 = vcmp.lt.s32.totalorder %v1926_v36, 8 }
  0xa4   :  { %1604 = vmatprep.mubr.msk.bf16.mxu0 %vm1449_vm10, %v1791_v39  ;;  %vm1354_vm10 = vcmask 1041409  }
  0xa5   :  { %v111_v54 = vpop.permute.xlu1 %110  ;;  %v108_v55 = vpop.permute.xlu0 %107 }
  0xa6   :  { %vm143_vm11 = vcmp.eq.s32.totalorder %v1926_v36, %v111_v54  ;;  %vm142_vm12 = vcmp.eq.s32.totalorder %v1926_v36, %v108_v55  ;;  %v2010_v55 = vld [vmem:[%s2246_s2 + $0x30] sm:$0xff]  }
  0xa7   :  { %vm1451_vm13 = vmpackc.low %vm143_vm11, %vm142_vm12  ;;  %vm1357_vm11 = vcmask 1042434   ;;  %vm1360_vm12 = vcmask 1043459  }
  0xa9   :  { %v117_v56 = vpop.permute.xlu1 %116  ;;  %v114_v57 = vpop.permute.xlu0 %113 }
  0xaa   :  { %vm145_vm14 = vcmp.eq.s32.totalorder %v1926_v36, %v117_v56  ;;  %1605 = vmatmul.mubr.msk.bf16.gmra.mrb[16].mxu0 %vm1451_vm13, %v1791_v39  ;;  %vm144_vm15 = vcmp.eq.s32.totalorder %v1926_v36, %v114_v57  ;;  %vm1363_vm13 = vcmask 1044484  }
  0xab   :  { %vm1453_vm0 = vmpackc.low %vm145_vm14, %vm144_vm15  ;;  %vm1366_vm14 = vcmask 1045509   ;;  %vm1369_vm15 = vcmask 1046534  }
  0xac   :  { %1608 = vmatprep.mubr.msk.bf16.mxu0 %vm1453_vm0, %v1791_v39  ;;  %vm1372_vm0 = vcmask 1047559  }
  0xad   :  { %v123_v58 = vpop.permute.xlu1 %122  ;;  %v120_v59 = vpop.permute.xlu0 %119 }
  0xae   :  { %vm147_vm1 = vcmp.eq.s32.totalorder %v1926_v36, %v123_v58  ;;  %vm146_vm2 = vcmp.eq.s32.totalorder %v1926_v36, %v120_v59 }
  0xaf   :  { %vm1455_vm3 = vmpackc.low %vm147_vm1, %vm146_vm2 }
  0xb2   :  { %1609 = vmatmul.mubr.msk.bf16.gmra.mrb[20].mxu0 %vm1455_vm3, %v1791_v39  ;;  %v1759_v39 = vld [vmem:[%s2246_s2 + $0x28] sm:$0xff]  }
 0x15d   :  { %v1590_v1 = vpop.f32.mrb[0].mxu0 }
 0x15e   :  { %v306_v2 = vpop.f32.mrb[1].mxu0  ;;  %v441_v4 = vrot.slane %v1590_v1, 1  ;;  %v778_v5 = vrot.slane %v1590_v1, 2  ;;  %v997_v13 = vrot.slane %v1590_v1, 3 }
 0x15f   :  { %v1591_v3 = vpop.f32.mrb[2].mxu0  ;;  %v438_v6 = vrot.slane %v306_v2, 1  ;;  %v775_v7 = vrot.slane %v306_v2, 2  ;;  %v994_v14 = vrot.slane %v306_v2, 3 }
 0x160   :  { %v309_v8 = vpop.f32.mrb[3].mxu0  ;;  %v443_v23 = vrot.slane %v1591_v3, 1  ;;  %v780_v24 = vrot.slane %v1591_v3, 2  ;;  %v999_v27 = vrot.slane %v1591_v3, 3 }
 0x161   :  { %v439_v9 = vrot.slane %v309_v8, 1  ;;  %v776_v10 = vrot.slane %v309_v8, 2  ;;  %v995_v11 = vrot.slane %v309_v8, 3  ;;  %v401_v12 = vpack.c.bf16 %v309_v8, %v306_v2 }
 0x163   :  { %1636 = vmatprep.mubr.msk.bf16.mxu1 %vm519_vm4, %v401_v12  ;;  %v440_v15 = vsel %vm437_vm5, %v438_v6, %v439_v9  ;;  %v442_v16 = vsel %vm437_vm5, %v439_v9, %v441_v4  ;;  %v1971_v17 = vsel %vm774_vm6, %v775_v7, %v776_v10  ;;  %v1974_v18 = vsel %vm774_vm6, %v776_v10, %v778_v5 }
 0x164   :  { %v494_v19 = vpack.c.bf16 %v442_v16, %v440_v15  ;;  %v831_v20 = vpack.c.bf16 %v1974_v18, %v1971_v17  ;;  %v1979_v21 = vsel %vm993_vm7, %v994_v14, %v995_v11  ;;  %v1982_v22 = vsel %vm993_vm7, %v995_v11, %v997_v13  ;;  %v1761_v17 = vld [vmem:[%s2246_s2 + $0x38] sm:$0xff]  }
 0x165   :  { %v1594_v25 = vpop.f32.mrb[4].mxu0  ;;  %v1050_v26 = vpack.c.bf16 %v1982_v22, %v1979_v21 }
 0x166   :  { %v448_v28 = vrot.slane %v1594_v25, 1  ;;  %v785_v29 = vrot.slane %v1594_v25, 2  ;;  %v1004_v30 = vrot.slane %v1594_v25, 3  ;;  %v322_v31 = vpop.f32.mrb[5].mxu0  ;;  %1616 = vmatprep.mubr.msk.bf16.mxu0 %vm519_vm4, %v494_v19 }
 0x167   :  { %v402_v32 = vpack.c.bf16 %v322_v31, %v1591_v3  ;;  %v444_v34 = vrot.slane %v322_v31, 1  ;;  %v781_v35 = vrot.slane %v322_v31, 2  ;;  %v1000_v37 = vrot.slane %v322_v31, 3  ;;  %v1595_v38 = vpop.f32.mrb[6].mxu0 }
 0x168   :  { %v403_v40 = vpack.c.bf16 %v1595_v38, %v1594_v25  ;;  %v449_v41 = vrot.slane %v1595_v38, 1  ;;  %v786_v42 = vrot.slane %v1595_v38, 2  ;;  %v1005_v43 = vrot.slane %v1595_v38, 3  ;;  %v325_v44 = vpop.f32.mrb[7].mxu0 }
 0x169   :  { %v445_v45 = vsel %vm437_vm5, %v443_v23, %v444_v34  ;;  %v446_v46 = vrot.slane %v325_v44, 1  ;;  %v1992_v47 = vsel %vm774_vm6, %v780_v24, %v781_v35  ;;  %v783_v48 = vrot.slane %v325_v44, 2  ;;  %1637 = vmatmul.mubr.msk.bf16.vlgmr.msra.gmra.mrb[0].mxu1 %vm519_vm4, %v402_v32 }
 0x16a   :  { %v1996_v49 = vsel %vm993_vm7, %v999_v27, %v1000_v37  ;;  %v1002_v50 = vrot.slane %v325_v44, 3  ;;  %1640 = vmatprep.mubr.msk.bf16.mxu1 %vm519_vm4, %v403_v40  ;;  %1653 = vmatpush3.bf16.msra.mxu1 %v1758_v0  ;;  %v450_v51 = vsel %vm437_vm5, %v448_v28, %v449_v41  ;;  %v2001_v52 = vsel %vm774_vm6, %v785_v29, %v786_v42 }
 0x16b   :  { %v447_v53 = vsel %vm437_vm5, %v444_v34, %v446_v46  ;;  %v2005_v54 = vsel %vm774_vm6, %v781_v35, %v783_v48  ;;  %1654 = vmatprep.subr.bf16.mxu1 %v1759_v39  ;;  %v2013_v56 = vsel %vm993_vm7, %v1004_v30, %v1005_v43 }
 0x16c   :  { %v495_v57 = vpack.c.bf16 %v447_v53, %v445_v45  ;;  %v832_v58 = vpack.c.bf16 %v2005_v54, %v1992_v47  ;;  %v2018_v59 = vsel %vm993_vm7, %v1000_v37, %v1002_v50 }
 0x16d   :  { %v1051_v60 = vpack.c.bf16 %v2018_v59, %v1996_v49  ;;  %v1598_v61 = vpop.f32.mrb[8].mxu0 }
 0x16e   :  { %v454_v62 = vrot.slane %v1598_v61, 1  ;;  %v338_v63 = vpop.f32.mrb[9].mxu0  ;;  %1617 = vmatmul.mubr.msk.bf16.vlgmr.msra.gmra.mrb[24].mxu0 %vm519_vm4, %v495_v57  ;;  %1655 = vmatpush3.bf16.msra.mxu1 %v1759_v39  ;;  %v791_v0 = vrot.slane %v1598_v61, 2  ;;  %v1010_v5 = vrot.slane %v1598_v61, 3 }
 0x16f   :  { %v451_v1 = vrot.slane %v338_v63, 1  ;;  %v788_v2 = vrot.slane %v338_v63, 2  ;;  %v1007_v3 = vrot.slane %v338_v63, 3  ;;  %v1599_v4 = vpop.f32.mrb[10].mxu0  ;;  %1672 = vmatprep.subr.bf16.mxu1 %v2010_v55 }
 0x170   :  { %v456_v6 = vrot.slane %v1599_v4, 1  ;;  %v793_v7 = vrot.slane %v1599_v4, 2  ;;  %v1012_v8 = vrot.slane %v1599_v4, 3  ;;  %v341_v9 = vpop.f32.mrb[11].mxu0 }
 0x171   :  { %v452_v10 = vsel %vm437_vm5, %v449_v41, %v451_v1  ;;  %v2026_v11 = vsel %vm774_vm6, %v786_v42, %v788_v2  ;;  %v2029_v12 = vsel %vm993_vm7, %v1005_v43, %v1007_v3  ;;  %v404_v13 = vpack.c.bf16 %v1598_v61, %v341_v9 }
 0x172   :  { %v457_v14 = vsel %vm437_vm5, %v454_v62, %v456_v6  ;;  %v2033_v15 = vsel %vm774_vm6, %v791_v0, %v793_v7  ;;  %v2036_v16 = vsel %vm993_vm7, %v1010_v5, %v1012_v8  ;;  %v453_v19 = vrot.slane %v341_v9, 1 }
 0x173   :  { %v790_v23 = vrot.slane %v341_v9, 2  ;;  %v1009_v24 = vrot.slane %v341_v9, 3  ;;  %1641 = vmatmul.mubr.msk.bf16.gmra.mrb[4].mxu1 %vm519_vm4, %v404_v13  ;;  %v496_v25 = vpack.c.bf16 %v452_v10, %v450_v51  ;;  %v833_v27 = vpack.c.bf16 %v2026_v11, %v2001_v52 }
 0x174   :  { %v455_v28 = vsel %vm437_vm5, %v453_v19, %v454_v62  ;;  %v1052_v29 = vpack.c.bf16 %v2029_v12, %v2013_v56 }
 0x175   :  { %1620 = vmatprep.mubr.msk.bf16.mxu0 %vm519_vm4, %v496_v25  ;;  %v1602_v30 = vpop.f32.mrb[12].mxu0  ;;  %v497_v31 = vpack.c.bf16 %v457_v14, %v455_v28  ;;  %v2046_v32 = vsel %vm774_vm6, %v790_v23, %v791_v0  ;;  %v2049_v34 = vsel %vm993_vm7, %v1009_v24, %v1010_v5 }
 0x176   :  { %v354_v35 = vpop.f32.mrb[13].mxu0  ;;  %v834_v37 = vpack.c.bf16 %v2033_v15, %v2046_v32  ;;  %v1053_v39 = vpack.c.bf16 %v2036_v16, %v2049_v34  ;;  %v461_v40 = vrot.slane %v1602_v30, 1  ;;  %v798_v41 = vrot.slane %v1602_v30, 2 }
 0x177   :  { %1621 = vmatmul.mubr.msk.bf16.gmra.mrb[28].mxu0 %vm519_vm4, %v497_v31  ;;  %v1603_v38 = vpop.f32.mrb[14].mxu0  ;;  %v458_v42 = vrot.slane %v354_v35, 1  ;;  %v795_v43 = vrot.slane %v354_v35, 2  ;;  %v1017_v51 = vrot.slane %v1602_v30, 3  ;;  %v1014_v53 = vrot.slane %v354_v35, 3 }
 0x178   :  { %v357_v44 = vpop.f32.mrb[15].mxu0  ;;  %v463_v4 = vrot.slane %v1603_v38, 1  ;;  %v800_v5 = vrot.slane %v1603_v38, 2  ;;  %v1019_v8 = vrot.slane %v1603_v38, 3  ;;  %v1252_v15 = vshrl.u32 %v50_v33, 7 }
 0x179   :  { %v405_v45 = vpack.c.bf16 %v357_v44, %v354_v35  ;;  %v459_v46 = vrot.slane %v357_v44, 1  ;;  %v796_v48 = vrot.slane %v357_v44, 2  ;;  %v1015_v50 = vrot.slane %v357_v44, 3 }
 0x17b   :  { %1644 = vmatprep.mubr.msk.bf16.mxu1 %vm519_vm4, %v405_v45  ;;  %v460_v57 = vsel %vm437_vm5, %v458_v42, %v459_v46  ;;  %v462_v61 = vsel %vm437_vm5, %v459_v46, %v461_v40  ;;  %v2060_v62 = vsel %vm774_vm6, %v795_v43, %v796_v48  ;;  %v2063_v63 = vsel %vm774_vm6, %v796_v48, %v798_v41 }
 0x17c   :  { %v498_v0 = vpack.c.bf16 %v462_v61, %v460_v57  ;;  %v835_v1 = vpack.c.bf16 %v2063_v63, %v2060_v62  ;;  %v2068_v2 = vsel %vm993_vm7, %v1014_v53, %v1015_v50  ;;  %v2071_v3 = vsel %vm993_vm7, %v1015_v50, %v1017_v51 }
 0x17d   :  { %v1606_v6 = vpop.f32.mrb[16].mxu0  ;;  %v1054_v7 = vpack.c.bf16 %v2071_v3, %v2068_v2  ;;  %v1792_v63 = vmov 13  }
 0x17e   :  { %v468_v9 = vrot.slane %v1606_v6, 1  ;;  %v805_v10 = vrot.slane %v1606_v6, 2  ;;  %v1024_v13 = vrot.slane %v1606_v6, 3  ;;  %v370_v14 = vpop.f32.mrb[17].mxu0  ;;  %1624 = vmatprep.mubr.msk.bf16.mxu0 %vm519_vm4, %v498_v0 }
 0x17f   :  { %v406_v19 = vpack.c.bf16 %v370_v14, %v1603_v38  ;;  %v464_v23 = vrot.slane %v370_v14, 1  ;;  %v801_v24 = vrot.slane %v370_v14, 2  ;;  %v1020_v25 = vrot.slane %v370_v14, 3  ;;  %v1607_v28 = vpop.f32.mrb[18].mxu0 }
 0x180   :  { %v407_v30 = vpack.c.bf16 %v1607_v28, %v1606_v6  ;;  %v469_v31 = vrot.slane %v1607_v28, 1  ;;  %v806_v35 = vrot.slane %v1607_v28, 2  ;;  %v1025_v40 = vrot.slane %v1607_v28, 3  ;;  %v373_v41 = vpop.f32.mrb[19].mxu0 }
 0x181   :  { %v466_v42 = vrot.slane %v373_v41, 1  ;;  %v803_v43 = vrot.slane %v373_v41, 2  ;;  %v1022_v44 = vrot.slane %v373_v41, 3  ;;  %1645 = vmatmul.mubr.msk.bf16.gmra.mrb[8].mxu1 %vm519_vm4, %v406_v19  ;;  %v465_v45 = vsel %vm437_vm5, %v463_v4, %v464_v23 }
 0x182   :  { %1648 = vmatprep.mubr.msk.bf16.mxu1 %vm519_vm4, %v407_v30  ;;  %v470_v38 = vsel %vm437_vm5, %v468_v9, %v469_v31  ;;  %v802_v46 = vsel %vm774_vm6, %v800_v5, %v801_v24  ;;  %v807_v48 = vsel %vm774_vm6, %v805_v10, %v806_v35  ;;  %v1021_v50 = vsel %vm993_vm7, %v1019_v8, %v1020_v25 }
 0x183   :  { %v467_v51 = vsel %vm437_vm5, %v464_v23, %v466_v42  ;;  %v804_v53 = vsel %vm774_vm6, %v801_v24, %v803_v43  ;;  %v1023_v57 = vsel %vm993_vm7, %v1020_v25, %v1022_v44  ;;  %v1026_v61 = vsel %vm993_vm7, %v1024_v13, %v1025_v40 }
 0x184   :  { %v499_v0 = vpack.c.bf16 %v467_v51, %v465_v45  ;;  %v836_v4 = vpack.c.bf16 %v804_v53, %v802_v46  ;;  %v1055_v6 = vpack.c.bf16 %v1023_v57, %v1021_v50 }
 0x185   :  { %v1610_v14 = vpop.f32.mrb[20].mxu0 }
 0x186   :  { %v474_v19 = vrot.slane %v1610_v14, 1  ;;  %v386_v9 = vpop.f32.mrb[21].mxu0  ;;  %1625 = vmatmul.mubr.msk.bf16.gmra.mrb[32].mxu0 %vm519_vm4, %v499_v0  ;;  %v811_v5 = vrot.slane %v1610_v14, 2  ;;  %v1030_v23 = vrot.slane %v1610_v14, 3 }
 0x187   :  { %v471_v10 = vrot.slane %v386_v9, 1  ;;  %v808_v28 = vrot.slane %v386_v9, 2  ;;  %v1027_v8 = vrot.slane %v386_v9, 3  ;;  %v1611_v30 = vpop.f32.mrb[22].mxu0 }
 0x188   :  { %v476_v41 = vrot.slane %v1611_v30, 1  ;;  %v813_v24 = vrot.slane %v1611_v30, 2  ;;  %v1032_v42 = vrot.slane %v1611_v30, 3  ;;  %v389_v25 = vpop.f32.mrb[23].mxu0 }
 0x189   :  { %v472_v13 = vsel %vm437_vm5, %v469_v31, %v471_v10  ;;  %v809_v43 = vsel %vm774_vm6, %v806_v35, %v808_v28  ;;  %v1028_v44 = vsel %vm993_vm7, %v1025_v40, %v1027_v8  ;;  %v408_v45 = vpack.c.bf16 %v1610_v14, %v389_v25 }
 0x18a   :  { %v477_v46 = vsel %vm437_vm5, %v474_v19, %v476_v41  ;;  %v814_v50 = vsel %vm774_vm6, %v811_v5, %v813_v24  ;;  %v1033_v51 = vsel %vm993_vm7, %v1030_v23, %v1032_v42  ;;  %v473_v53 = vrot.slane %v389_v25, 1 }
 0x18b   :  { %v810_v57 = vrot.slane %v389_v25, 2  ;;  %v1029_v0 = vrot.slane %v389_v25, 3  ;;  %1649 = vmatmul.mubr.msk.bf16.gmra.mrb[12].mxu1 %vm519_vm4, %v408_v45  ;;  %v500_v9 = vpack.c.bf16 %v472_v13, %v470_v38  ;;  %v837_v30 = vpack.c.bf16 %v809_v43, %v807_v48 }
 0x18c   :  { %1656 = vmatprep.mubr.msk.bf16.mxu1 %vm519_vm4, %v831_v20  ;;  %v475_v31 = vsel %vm437_vm5, %v473_v53, %v474_v19  ;;  %v1056_v35 = vpack.c.bf16 %v1028_v44, %v1026_v61 }
 0x18d   :  { %1628 = vmatprep.mubr.msk.bf16.mxu0 %vm519_vm4, %v500_v9  ;;  %v501_v40 = vpack.c.bf16 %v477_v46, %v475_v31  ;;  %v812_v14 = vsel %vm774_vm6, %v810_v57, %v811_v5  ;;  %v1031_v10 = vsel %vm993_vm7, %v1029_v0, %v1030_v23 }
 0x18e   :  { %v838_v28 = vpack.c.bf16 %v814_v50, %v812_v14  ;;  %v1057_v8 = vpack.c.bf16 %v1033_v51, %v1031_v10 }
 0x18f   :  { %1629 = vmatmul.mubr.msk.bf16.gmra.mrb[36].mxu0 %vm519_vm4, %v501_v40 }
 0x193   :  { %1657 = vmatmul.mubr.msk.bf16.vlgmr.msra.gmra.mrb[0].mxu1 %vm519_vm4, %v832_v58 }
 0x194   :  { %1673 = vmatpush3.bf16.msra.mxu1 %v2010_v55  ;;  %1660 = vmatprep.mubr.msk.bf16.mxu1 %vm519_vm4, %v833_v27 }
 0x195   :  { %1674 = vmatprep.subr.bf16.mxu1 %v1761_v17 }
 0x198   :  { %1675 = vmatpush3.bf16.msra.mxu1 %v1761_v17 }
 0x19b   :  { %1661 = vmatmul.mubr.msk.bf16.gmra.mrb[4].mxu1 %vm519_vm4, %v834_v37 }
 0x19c   :  { %1664 = vmatprep.mubr.msk.bf16.mxu1 %vm519_vm4, %v835_v1  ;;  %v1255_v1 = vsel %vm1254_vm8, 14, %v1792_v63  ;;  %v2198_v63 = vld [vmem:[%s2248_s4] ss:$0 sm:$0xff] }
 0x1a3   :  { %1665 = vmatmul.mubr.msk.bf16.gmra.mrb[8].mxu1 %vm519_vm4, %v836_v4 }
 0x1a4   :  { %1668 = vmatprep.mubr.msk.bf16.mxu1 %vm519_vm4, %v837_v30 }
 0x1ab   :  { %1669 = vmatmul.mubr.msk.bf16.gmra.mrb[12].mxu1 %vm519_vm4, %v838_v28 }
 0x1ac   :  { %1676 = vmatprep.mubr.msk.bf16.mxu1 %vm519_vm4, %v1050_v26 }
 0x1b3   :  { %1677 = vmatmul.mubr.msk.bf16.vlgmr.msra.gmra.mrb[0].mxu1 %vm519_vm4, %v1051_v60 }
 0x1b4   :  { %1680 = vmatprep.mubr.msk.bf16.mxu1 %vm519_vm4, %v1052_v29  ;;  %v2169_v29 = vld [vmem:[%s2247_s3] ss:$0 sm:$0xff] }
 0x1bb   :  { %1681 = vmatmul.mubr.msk.bf16.gmra.mrb[4].mxu1 %vm519_vm4, %v1053_v39  ;;  %v1253_v39 = vadd.s32 8, %v1252_v15 }
 0x1bc   :  { %1684 = vmatprep.mubr.msk.bf16.mxu1 %vm519_vm4, %v1054_v7 }
 0x1bd   :  { %vm2174_vm9 = vcmp.lt.s32.totalorder %v1253_v39, %v1255_v1 }
 0x1c3   :  { %1685 = vmatmul.mubr.msk.bf16.gmra.mrb[8].mxu1 %vm519_vm4, %v1055_v6 }
 0x1c4   :  { %1688 = vmatprep.mubr.msk.bf16.mxu1 %vm519_vm4, %v1056_v35 }
 0x1cb   :  { %1689 = vmatmul.mubr.msk.bf16.gmra.mrb[12].mxu1 %vm519_vm4, %v1057_v8 }
 0x241   :  { %v1618_v18 = vpop.f32.mrb[24].mxu0 }
 0x242   :  { %v578_v20 = vpop.f32.mrb[25].mxu0 }
 0x243   :  { %v1619_v21 = vpop.f32.mrb[26].mxu0 }
 0x244   :  { %v581_v22 = vpop.f32.mrb[27].mxu0 }
 0x24a   :  { %v1622_v26 = vpop.f32.mrb[28].mxu0 }
 0x24b   :  { %v594_v47 = vpop.f32.mrb[29].mxu0 }
 0x24c   :  { %v1623_v49 = vpop.f32.mrb[30].mxu0 }
 0x24d   :  { %v597_v52 = vpop.f32.mrb[31].mxu0 }
 0x259   :  { %v1626_v54 = vpop.f32.mrb[32].mxu0 }
 0x25a   :  { %v2150_v55 = vpop.f32.mrb[33].mxu0 }
 0x25b   :  { %v2152_v56 = vpop.f32.mrb[34].mxu0 }
 0x25c   :  { %v2154_v58 = vpop.f32.mrb[35].mxu0 }
 0x262   :  { %v2156_v59 = vpop.f32.mrb[36].mxu0 }
 0x263   :  { %v2158_v60 = vpop.f32.mrb[37].mxu0 }
 0x264   :  { %v2160_v11 = vpop.f32.mrb[38].mxu0 }
 0x265   :  { %v2162_v12 = vpop.f32.mrb[39].mxu0 }
 0x286   :  { %v1678_v16 = vpop.f32.mrb[0].mxu1 }
 0x287   :  { %v1692_v27 = vadd.f32 %v1678_v16, %v1618_v18  ;;  %v1133_v32 = vpop.f32.mrb[1].mxu1 }
 0x288   :  { %v1693_v34 = vadd.f32 %v1133_v32, %v578_v20  ;;  %v1679_v37 = vpop.f32.mrb[2].mxu1 }
 0x289   :  { %v1694_v62 = vadd.f32 %v1679_v37, %v1619_v21  ;;  %v1136_v2 = vpop.f32.mrb[3].mxu1  ;;  %v1221_v3 = vadd.f32 %v1692_v27, %v2169_v29 }
 0x28a   :  { %v1695_v33 = vadd.f32 %v1136_v2, %v581_v22  ;;  %v1219_v7 = vadd.f32 %v1693_v34, %v2169_v29 }
 0x28b   :  { %v1222_v36 = vadd.f32 %v1694_v62, %v2169_v29  ;;  %v1237_v4 = vmax.f32 %v1221_v3, 0.0 }
 0x28c   :  { %v1220_v48 = vadd.f32 %v1695_v33, %v2169_v29  ;;  %v1235_v5 = vmax.f32 %v1219_v7, 0.0 }
 0x28d   :  { %v1238_v61 = vmax.f32 %v1222_v36, 0.0 }
 0x28e   :  { %v1236_v6 = vmax.f32 %v1220_v48, 0.0  ;;  %v1682_v19 = vpop.f32.mrb[4].mxu1 }
 0x28f   :  { %v1261_v23 = vsel %vm2174_vm9, %v1238_v61, 0.0  ;;  %v1696_v41 = vadd.f32 %v1682_v19, %v1622_v26  ;;  %v1149_v24 = vpop.f32.mrb[5].mxu1 }
 0x290   :  { %v1281_v42 = vmax.f32 %v1237_v4, %v1261_v23  ;;  %v1259_v25 = vsel %vm2174_vm9, %v1236_v6, 0.0  ;;  %v1697_v13 = vadd.f32 %v1149_v24, %v594_v47  ;;  %v1683_v43 = vpop.f32.mrb[6].mxu1 }
 0x291   :  { %v1274_v44 = vmax.f32 %v1235_v5, %v1259_v25  ;;  %v1698_v45 = vadd.f32 %v1683_v43, %v1623_v49  ;;  %v1152_v46 = vpop.f32.mrb[7].mxu1  ;;  %v1225_v51 = vadd.f32 %v1696_v41, %v2169_v29 }
 0x292   :  { %v1282_v50 = vrot.slane %v1281_v42, 4  ;;  %v1699_v53 = vadd.f32 %v1152_v46, %v597_v52  ;;  %v1223_v0 = vadd.f32 %v1697_v13, %v2169_v29 }
 0x293   :  { %v1275_v57 = vrot.slane %v1274_v44, 4  ;;  %v1226_v9 = vadd.f32 %v1698_v45, %v2169_v29  ;;  %v1241_v10 = vmax.f32 %v1225_v51, 0.0 }
 0x294   :  { %v1283_v30 = vmax.f32 %v1281_v42, %v1282_v50  ;;  %v1224_v31 = vadd.f32 %v1699_v53, %v2169_v29  ;;  %v1239_v18 = vmax.f32 %v1223_v0, 0.0 }
 0x295   :  { %v1276_v35 = vmax.f32 %v1274_v44, %v1275_v57  ;;  %v1242_v40 = vmax.f32 %v1226_v9, 0.0 }
 0x296   :  { %v1284_v14 = vrot.slane %v1283_v30, 2  ;;  %v1240_v28 = vmax.f32 %v1224_v31, 0.0  ;;  %v1686_v8 = vpop.f32.mrb[8].mxu1 }
 0x297   :  { %v1277_v17 = vrot.slane %v1276_v35, 2  ;;  %v1265_v20 = vsel %vm2174_vm9, %v1242_v40, 0.0  ;;  %v1700_v21 = vadd.f32 %v1686_v8, %v1626_v54  ;;  %v1165_v22 = vpop.f32.mrb[9].mxu1 }
 0x298   :  { %v1285_v26 = vmax.f32 %v1283_v30, %v1284_v14  ;;  %v1295_v47 = vmax.f32 %v1241_v10, %v1265_v20  ;;  %v1263_v49 = vsel %vm2174_vm9, %v1240_v28, 0.0  ;;  %v1701_v52 = vadd.f32 %v1165_v22, %v2150_v55  ;;  %v1687_v15 = vpop.f32.mrb[10].mxu1 }
 0x299   :  { %v1278_v16 = vmax.f32 %v1276_v35, %v1277_v17  ;;  %v1288_v27 = vmax.f32 %v1239_v18, %v1263_v49  ;;  %v1702_v32 = vadd.f32 %v1687_v15, %v2152_v56  ;;  %v1168_v34 = vpop.f32.mrb[11].mxu1  ;;  %v1229_v62 = vadd.f32 %v1700_v21, %v2169_v29 }
 0x29a   :  { %v1286_v37 = vrot.slane %v1285_v26, 1  ;;  %v1296_v39 = vrot.slane %v1295_v47, 4  ;;  %v1703_v54 = vadd.f32 %v1168_v34, %v2154_v58  ;;  %v1227_v55 = vadd.f32 %v1701_v52, %v2169_v29 }
 0x29b   :  { %v1279_v1 = vrot.slane %v1278_v16, 1  ;;  %v1289_v2 = vrot.slane %v1288_v27, 4  ;;  %v1230_v3 = vadd.f32 %v1702_v32, %v2169_v29  ;;  %v1245_v6 = vmax.f32 %v1229_v62, 0.0 }
 0x29c   :  { %v1287_v33 = vmax.f32 %v1285_v26, %v1286_v37  ;;  %v1297_v56 = vmax.f32 %v1295_v47, %v1296_v39  ;;  %v1228_v7 = vadd.f32 %v1703_v54, %v2169_v29  ;;  %v1243_v41 = vmax.f32 %v1227_v55, 0.0 }
 0x29d   :  { %v1280_v36 = vmax.f32 %v1278_v16, %v1279_v1  ;;  %v1290_v48 = vmax.f32 %v1288_v27, %v1289_v2  ;;  %v1246_v61 = vmax.f32 %v1230_v3, 0.0 }
 0x29e   :  { %v1338_v58 = vmul.f32 %v2198_v63, %v1287_v33  ;;  %v1298_v4 = vrot.slane %v1297_v56, 2  ;;  %v1244_v19 = vmax.f32 %v1228_v7, 0.0  ;;  %v1690_v5 = vpop.f32.mrb[12].mxu1 }
 0x29f   :  { %v1291_v23 = vrot.slane %v1290_v48, 2  ;;  %v1269_v24 = vsel %vm2174_vm9, %v1246_v61, 0.0  ;;  %v1704_v42 = vadd.f32 %v1690_v5, %v2156_v59  ;;  %v1181_v25 = vpop.f32.mrb[13].mxu1  ;;  %v1337_v13 = vmul.f32 %v2198_v63, %v1280_v36 }
 0x2a0   :  { %v1299_v43 = vmax.f32 %v1297_v56, %v1298_v4  ;;  %v1309_v44 = vmax.f32 %v1245_v6, %v1269_v24  ;;  %v1267_v45 = vsel %vm2174_vm9, %v1244_v19, 0.0  ;;  %v1691_v46 = vpop.f32.mrb[14].mxu1  ;;  %v1353_v50 = vrot.slane %v1338_v58, 7 }
 0x2a1   :  { %v1292_v51 = vmax.f32 %v1290_v48, %v1291_v23  ;;  %v1302_v53 = vmax.f32 %v1243_v41, %v1267_v45  ;;  %v1705_v57 = vadd.f32 %v1181_v25, %v2158_v60  ;;  %v1184_v0 = vpop.f32.mrb[15].mxu1  ;;  %v1706_v31 = vadd.f32 %v1691_v46, %v2160_v11 }
 0x2a2   :  { %v1300_v9 = vrot.slane %v1299_v43, 1  ;;  %v1310_v30 = vrot.slane %v1309_v44, 4  ;;  %v1707_v59 = vadd.f32 %v1184_v0, %v2162_v12  ;;  %v1233_v14 = vadd.f32 %v1704_v42, %v2169_v29 }
 0x2a3   :  { %v1293_v35 = vrot.slane %v1292_v51, 1  ;;  %v1303_v40 = vrot.slane %v1302_v53, 4  ;;  %v1231_v10 = vadd.f32 %v1705_v57, %v2169_v29  ;;  %v1234_v17 = vadd.f32 %v1706_v31, %v2169_v29 }
 0x2a4   :  { %v1301_v28 = vmax.f32 %v1299_v43, %v1300_v9  ;;  %v1311_v8 = vmax.f32 %v1309_v44, %v1310_v30  ;;  %v1232_v18 = vadd.f32 %v1707_v59, %v2169_v29  ;;  %v1355_v21 = vsel %vm1354_vm10, %v1353_v50, %v1337_v13 }
 0x2a5   :  { %v1294_v60 = vmax.f32 %v1292_v51, %v1293_v35  ;;  %v1304_v20 = vmax.f32 %v1302_v53, %v1303_v40  ;;  %v1250_v22 = vmax.f32 %v1234_v17, 0.0  ;;  %v1249_v52 = vmax.f32 %v1233_v14, 0.0 }
 0x2a6   :  { %v1340_v11 = vmul.f32 %v2198_v63, %v1301_v28  ;;  %v1312_v12 = vrot.slane %v1311_v8, 2  ;;  %v1248_v26 = vmax.f32 %v1232_v18, 0.0  ;;  %v1247_v15 = vmax.f32 %v1231_v10, 0.0 }
 0x2a7   :  { %v1339_v47 = vmul.f32 %v2198_v63, %v1294_v60  ;;  %v1305_v49 = vrot.slane %v1304_v20, 2  ;;  %v1273_v27 = vsel %vm2174_vm9, %v1250_v22, 0.0  ;;  %v1378_v57 = vstv %s2249_s5 }
 0x2a8   :  { %v1313_v16 = vmax.f32 %v1311_v8, %v1312_v12  ;;  %v1271_v29 = vsel %vm2174_vm9, %v1248_v26, 0.0  ;;  %v1323_v37 = vmax.f32 %v1249_v52, %v1273_v27  ;;  %v1359_v54 = vrot.slane %v1340_v11, 5 }
 0x2a9   :  { %v1356_v32 = vrot.slane %v1339_v47, 6  ;;  %v1306_v34 = vmax.f32 %v1304_v20, %v1305_v49  ;;  %v1316_v39 = vmax.f32 %v1247_v15, %v1271_v29 }
 0x2aa   :  { %v1314_v62 = vrot.slane %v1313_v16, 1  ;;  %v1324_v2 = vrot.slane %v1323_v37, 4 }
 0x2ab   :  { %v1307_v1 = vrot.slane %v1306_v34, 1  ;;  %v1317_v55 = vrot.slane %v1316_v39, 4  ;;  %v1358_v3 = vsel %vm1357_vm11, %v1356_v32, %v1355_v21 }
 0x2ac   :  { %v1315_v33 = vmax.f32 %v1313_v16, %v1314_v62  ;;  %v1361_v56 = vsel %vm1360_vm12, %v1359_v54, %v1358_v3  ;;  %v1325_v36 = vmax.f32 %v1323_v37, %v1324_v2 }
 0x2ad   :  { %v1308_v7 = vmax.f32 %v1306_v34, %v1307_v1  ;;  %v1318_v48 = vmax.f32 %v1316_v39, %v1317_v55 }
 0x2ae   :  { %v1342_v38 = vmul.f32 %v2198_v63, %v1315_v33  ;;  %v1326_v61 = vrot.slane %v1325_v36, 2 }
 0x2af   :  { %v1319_v58 = vrot.slane %v1318_v48, 2  ;;  %v1341_v4 = vmul.f32 %v2198_v63, %v1308_v7 }
 0x2b0   :  { %v1327_v19 = vmax.f32 %v1325_v36, %v1326_v61  ;;  %v1365_v23 = vrot.slane %v1342_v38, 3 }
 0x2b1   :  { %v1320_v6 = vmax.f32 %v1318_v48, %v1319_v58  ;;  %v1362_v5 = vrot.slane %v1341_v4, 4 }
 0x2b2   :  { %v1328_v24 = vrot.slane %v1327_v19, 1 }
 0x2b3   :  { %v1321_v41 = vrot.slane %v1320_v6, 1  ;;  %v1364_v42 = vsel %vm1363_vm13, %v1362_v5, %v1361_v56 }
 0x2b4   :  { %v1367_v25 = vsel %vm1366_vm14, %v1365_v23, %v1364_v42  ;;  %v1329_v43 = vmax.f32 %v1327_v19, %v1328_v24 }
 0x2b5   :  { %v1322_v13 = vmax.f32 %v1320_v6, %v1321_v41 }
 0x2b6   :  { %v1344_v45 = vmul.f32 %v2198_v63, %v1329_v43 }
 0x2b7   :  { %v1343_v44 = vmul.f32 %v2198_v63, %v1322_v13 }
 0x2b8   :  { %v1371_v50 = vrot.slane %v1344_v45, 1 }
 0x2b9   :  { %v1368_v46 = vrot.slane %v1343_v44, 2 }
 0x2bb   :  { %v1370_v51 = vsel %vm1369_vm15, %v1368_v46, %v1367_v25 }
 0x2bc   :  { %v1373_v53 = vsel %vm1372_vm0, %v1371_v50, %v1370_v51 }
 0x2bd   :  { %1375 = vadd.xlane.f32.xlu0 %v1373_v53 }
 0x34a   :  { %v1376_v0 = vpop.xlane.xlu0 %1375 }
 0x34b   :  { %v1379_v9 = vadd.f32 %v1378_v57, %v1376_v0 }
 0x34d   :  { %v1511_v30 = vmul.f32 -1.442695, %v1379_v9 }
 0x34f   :  { %1762 = vpow2.f32 %v1511_v30 }
 0x359   :  { %v1763_v31 = vpop.eup %1762 }
 0x35a   :  { %v1383_v59 = vadd.f32 1.0, %v1763_v31 }
 0x35c   :  { %1764 = vrcp.f32 %v1383_v59 }
 0x366   :  { %v1765_v63 = vpop.eup %1764 }
 0x367   :  { %1386 = vst [vmem:[#allocation3] sm:$0xff] %v1765_v63 }
 0x368   :  { %1777 = shalt.err (!%p1774_p4)
}
 0x369   :  { %s1778_s9 = scalar_lea.hbm %s2250_s6, 128 }
 0x36a   :  { %p1779_p5 = scmp.ne.s32.totalorder %s2250_s6, %s1778_s9  ;;  %p1782_p6 = scmp.lt.u32.totalorder %s1778_s9, %s2250_s6 }
 0x36c   :  { %p1784_p7 = pnand %p1782_p6, %p1779_p5 }
 0x36e   :  { %1787 = shalt.err (!%p1784_p7)
}
 0x36f   :  { %1396 = dma.vmem_to_hbm [thread:$0]  %s1394_s7, 128, %s2250_s6, [#allocation4]  }
 0x370   :  { %1788 = dma.done.wait [#allocation4], 128  }
 0x371   :  { %1789 = vsyncadd [#allocation4], 4294967168 }
 0x372   :  { %1400 = vsyncpa [#allocation4], 1 }

// kernel: tpu_custom_call.1
= control target key start
LH: loop header
LB: loop body
LE: loop exit
PB: predicated region body
PF: predicated region fallthrough
CT: control target
= control target key end

     0   :  { %v1790_v2 = vmov 0   ;;  %s2244_s0 = inlined_call_operand.vmem [shape: s32[192,1], index: 0, kind: input, shape index: {}]   ;;  %s2245_s1 = inlined_call_operand.vmem [shape: bf16[128,32], index: 1, kind: input, shape index: {}]   ;;  %s2246_s2 = inlined_call_operand.vmem [shape: bf16[4,32,128], index: 2, kind: input, shape index: {}]   ;;  %s2247_s3 = inlined_call_operand.vmem [shape: f32[1,128], index: 3, kind: input, shape index: {}]   ;;  %s2248_s4 = inlined_call_operand.vmem [shape: f32[1,128], index: 4, kind: input, shape index: {}]   ;;  %s2249_s5 = inlined_call_operand.<no memory space> [shape: f32[1,1], index: 5, kind: input, shape index: {}]   ;;  %s2250_s6 = inlined_call_operand.hbm [shape: f32[8,128], index: 6, kind: output, shape index: {}]  }
   0x1   :  { %v28_v0 = vld [vmem:[%s2244_s0 + $0x10] sm:$0xff]  ;;  %v26_v1 = vld [vmem:[%s2244_s0] sm:$0xff]  ;;  %1745 = vset.pattern.permute.xlu1 %v1790_v2  ;;  %1744 = vset.pattern.permute.xlu0 %v1790_v2  ;;  %v29_v3 = vld [vmem:[%s2244_s0 + $0x18] sm:$0xff] }
   0x2   :  { %59 = vperm.xlu1 %1745, %v28_v0   ;;  %53 = vperm.xlu0 %1744, %v26_v1   ;;  %v27_v4 = vld [vmem:[%s2244_s0 + $0x8] sm:$0xff]  ;;  %v30_v6 = vld [vmem:[%s2244_s0 + $0x20] sm:$0xff]  ;;  %v33_v9 = vld [vmem:[%s2244_s0 + $0x38] sm:$0xff] }
   0x3   :  { %v31_v5 = vld [vmem:[%s2244_s0 + $0x28] sm:$0xff]  ;;  %v1746_v7 = vld [vmem:[%s2245_s1] sm:$0xff]   ;;  %v32_v10 = vld [vmem:[%s2244_s0 + $0x30] sm:$0xff] }
   0x4   :  { %v1747_v8 = vld [vmem:[%s2245_s1 + $0x8] sm:$0xff]   ;;  %1572 = vmatprep.subr.bf16.mxu0 %v1746_v7  ;;  %v1748_v11 = vld [vmem:[%s2245_s1 + $0x10] sm:$0xff]   ;;  %v34_v13 = vld [vmem:[%s2244_s0 + $0x40] sm:$0xff] }
   0x5   :  { %1573 = vmatpush3.bf16.msra.mxu0 %v1746_v7  ;;  %v35_v12 = vld [vmem:[%s2244_s0 + $0x48] sm:$0xff]  ;;  %v1749_v14 = vld [vmem:[%s2245_s1 + $0x18] sm:$0xff]   ;;  %v36_v16 = vld [vmem:[%s2244_s0 + $0x50] sm:$0xff] }
   0x6   :  { %62 = vperm.xlu1 %1745, %v29_v3   ;;  %56 = vperm.xlu0 %1744, %v27_v4   ;;  %v37_v15 = vld [vmem:[%s2244_s0 + $0x58] sm:$0xff]  ;;  %v1750_v17 = vld [vmem:[%s2245_s1 + $0x20] sm:$0xff]  }
   0x7   :  { %1574 = vmatprep.subr.bf16.mxu0 %v1747_v8 }
   0x9   :  { %1575 = vmatpush3.bf16.msra.mxu0 %v1747_v8 }
   0xa   :  { %68 = vperm.xlu1 %1745, %v31_v5   ;;  %65 = vperm.xlu0 %1744, %v30_v6  }
   0xb   :  { %1576 = vmatprep.subr.bf16.mxu0 %v1748_v11 }
   0xd   :  { %1577 = vmatpush3.bf16.msra.mxu0 %v1748_v11 }
   0xe   :  { %74 = vperm.xlu1 %1745, %v33_v9   ;;  %71 = vperm.xlu0 %1744, %v32_v10  }
   0xf   :  { %1578 = vmatprep.subr.bf16.mxu0 %v1749_v14 }
  0x12   :  { %80 = vperm.xlu1 %1745, %v35_v12   ;;  %77 = vperm.xlu0 %1744, %v34_v13  }
  0x13   :  { %12 = vsyncpa [#allocation4], 0  ;;  %v39_v18 = vld [vmem:[%s2244_s0 + $0x68] sm:$0xff]  ;;  %v38_v19 = vld [vmem:[%s2244_s0 + $0x60] sm:$0xff]  ;;  %1579 = vmatpush3.bf16.msra.mxu0 %v1749_v14  ;;  %v50_v33 = vlaneseq  ;;  %v1791_v39 = vmov 1.0|1.0  }
  0x14   :  { %1580 = vmatprep.subr.bf16.mxu0 %v1750_v17  ;;  %v1751_v20 = vld [vmem:[%s2245_s1 + $0x28] sm:$0xff]   ;;  %v41_v21 = vld [vmem:[%s2244_s0 + $0x78] sm:$0xff]  ;;  %v40_v22 = vld [vmem:[%s2244_s0 + $0x70] sm:$0xff]  ;;  %s1793_s30 = smov [#allocation3]  }
  0x15   :  { %v1752_v23 = vld [vmem:[%s2245_s1 + $0x30] sm:$0xff]   ;;  %v43_v24 = vld [vmem:[%s2244_s0 + $0x88] sm:$0xff]  ;;  %v42_v25 = vld [vmem:[%s2244_s0 + $0x80] sm:$0xff]  ;;  %v1926_v36 = vand.u32 127, %v50_v33  ;;  %s1393_s7 = sshll.u32 %s1793_s30, 4  ;;  %s1394_s7 = int_to_ptr.vmem [resolvable:$true] %s1393_s7 }
  0x16   :  { %86 = vperm.xlu1 %1745, %v37_v15   ;;  %83 = vperm.xlu0 %1744, %v36_v16   ;;  %v1753_v26 = vld [vmem:[%s2245_s1 + $0x38] sm:$0xff]   ;;  %v44_v28 = vld [vmem:[%s2244_s0 + $0x90] sm:$0xff]  ;;  %v47_v29 = vld [vmem:[%s2244_s0 + $0xa8] sm:$0xff]  ;;  %s1766_s1 = scalar_lea.vmem %s1394_s7, 128  ;;  %p1771_p1 = scmp.lt.s32.totalorder %s1394_s7, %s1394_s7 }
  0x17   :  { %1581 = vmatpush3.bf16.msra.mxu0 %v1750_v17  ;;  %v45_v27 = vld [vmem:[%s2244_s0 + $0x98] sm:$0xff]  ;;  %v46_v30 = vld [vmem:[%s2244_s0 + $0xa0] sm:$0xff]  ;;  %v48_v32 = vld [vmem:[%s2244_s0 + $0xb0] sm:$0xff]  ;;  %p1767_p0 = scmp.ne.s32.totalorder %s1394_s7, %s1766_s1  ;;  %p1772_p2 = scmp.lt.s32.totalorder %s1766_s1, %s1766_s1 }
  0x18   :  { %1582 = vmatprep.subr.bf16.mxu0 %v1751_v20  ;;  %v49_v31 = vld [vmem:[%s2244_s0 + $0xb8] sm:$0xff]  ;;  %v1754_v60 = vld [vmem:[%s2246_s2] sm:$0xff]   ;;  %v1755_v61 = vld [vmem:[%s2246_s2 + $0x8] sm:$0xff]  }
  0x19   :  { %1632 = vmatprep.subr.bf16.mxu1 %v1754_v60  ;;  %v1756_v62 = vld [vmem:[%s2246_s2 + $0x10] sm:$0xff]   ;;  %v1757_v63 = vld [vmem:[%s2246_s2 + $0x18] sm:$0xff]   ;;  %v1758_v0 = vld [vmem:[%s2246_s2 + $0x20] sm:$0xff]   ;;  %p1773_p3 = por %p1772_p2, %p1771_p1 }
  0x1a   :  { %92 = vperm.xlu1 %1745, %v39_v18   ;;  %89 = vperm.xlu0 %1744, %v38_v19  }
  0x1b   :  { %1583 = vmatpush3.bf16.msra.mxu0 %v1751_v20  ;;  %1633 = vmatpush3.bf16.msra.mxu1 %v1754_v60  ;;  %p1774_p4 = pnand %p1773_p3, %p1767_p0 }
  0x1c   :  { %1584 = vmatprep.subr.bf16.mxu0 %v1752_v23  ;;  %1634 = vmatprep.subr.bf16.mxu1 %v1755_v61 }
  0x1e   :  { %98 = vperm.xlu1 %1745, %v41_v21   ;;  %95 = vperm.xlu0 %1744, %v40_v22  }
  0x1f   :  { %1585 = vmatpush3.bf16.msra.mxu0 %v1752_v23  ;;  %1635 = vmatpush3.bf16.msra.mxu1 %v1755_v61 }
  0x20   :  { %1586 = vmatprep.subr.bf16.mxu0 %v1753_v26  ;;  %1652 = vmatprep.subr.bf16.mxu1 %v1758_v0 }
  0x22   :  { %104 = vperm.xlu1 %1745, %v43_v24   ;;  %101 = vperm.xlu0 %1744, %v42_v25  }
  0x23   :  { %1587 = vmatpush3.bf16.msra.mxu0 %v1753_v26 }
  0x24   :  { %1612 = vmatprep.subr.bf16.mxu0 %v1756_v62 }
  0x26   :  { %110 = vperm.xlu1 %1745, %v45_v27   ;;  %107 = vperm.xlu0 %1744, %v44_v28  }
  0x2a   :  { %116 = vperm.xlu1 %1745, %v47_v29   ;;  %113 = vperm.xlu0 %1744, %v46_v30  }
  0x2e   :  { %122 = vperm.xlu1 %1745, %v49_v31   ;;  %119 = vperm.xlu0 %1744, %v48_v32  }
  0x81   :  { %v60_v34 = vpop.permute.xlu1 %59  ;;  %v54_v35 = vpop.permute.xlu0 %53 }
  0x82   :  { %vm126_vm0 = vcmp.eq.s32.totalorder %v1926_v36, %v60_v34  ;;  %vm124_vm3 = vcmp.eq.s32.totalorder %v1926_v36, %v54_v35 }
  0x85   :  { %v63_v37 = vpop.permute.xlu1 %62  ;;  %v57_v38 = vpop.permute.xlu0 %56 }
  0x86   :  { %vm127_vm1 = vcmp.eq.s32.totalorder %v1926_v36, %v63_v37  ;;  %vm125_vm2 = vcmp.eq.s32.totalorder %v1926_v36, %v57_v38 }
  0x87   :  { %vm1435_vm4 = vmpackc.low %vm127_vm1, %vm126_vm0 }
  0x88   :  { %vm1433_vm5 = vmpackc.low %vm125_vm2, %vm124_vm3 }
  0x89   :  { %1588 = vmatprep.mubr.msk.bf16.mxu0 %vm1433_vm5, %v1791_v39  ;;  %v69_v40 = vpop.permute.xlu1 %68  ;;  %v66_v41 = vpop.permute.xlu0 %65 }
  0x8a   :  { %vm129_vm6 = vcmp.eq.s32.totalorder %v1926_v36, %v69_v40  ;;  %1589 = vmatmul.mubr.msk.bf16.vlgmr.msra.gmra.mrb[0].mxu0 %vm1435_vm4, %v1791_v39  ;;  %vm128_vm7 = vcmp.eq.s32.totalorder %v1926_v36, %v66_v41 }
  0x8b   :  { %vm1437_vm8 = vmpackc.low %vm129_vm6, %vm128_vm7  ;;  %1613 = vmatpush3.bf16.msra.mxu0 %v1756_v62 }
  0x8c   :  { %1592 = vmatprep.mubr.msk.bf16.mxu0 %vm1437_vm8, %v1791_v39  ;;  %1614 = vmatprep.subr.bf16.mxu0 %v1757_v63 }
  0x8d   :  { %v75_v42 = vpop.permute.xlu1 %74  ;;  %v72_v43 = vpop.permute.xlu0 %71 }
  0x8e   :  { %vm131_vm9 = vcmp.eq.s32.totalorder %v1926_v36, %v75_v42  ;;  %vm130_vm10 = vcmp.eq.s32.totalorder %v1926_v36, %v72_v43 }
  0x8f   :  { %vm1439_vm11 = vmpackc.low %vm131_vm9, %vm130_vm10  ;;  %1615 = vmatpush3.bf16.msra.mxu0 %v1757_v63 }
  0x91   :  { %v81_v44 = vpop.permute.xlu1 %80  ;;  %v78_v45 = vpop.permute.xlu0 %77 }
  0x92   :  { %vm133_vm12 = vcmp.eq.s32.totalorder %v1926_v36, %v81_v44  ;;  %1593 = vmatmul.mubr.msk.bf16.gmra.mrb[4].mxu0 %vm1439_vm11, %v1791_v39  ;;  %vm132_vm13 = vcmp.eq.s32.totalorder %v1926_v36, %v78_v45 }
  0x93   :  { %vm1441_vm14 = vmpackc.low %vm133_vm12, %vm132_vm13 }
  0x94   :  { %1596 = vmatprep.mubr.msk.bf16.mxu0 %vm1441_vm14, %v1791_v39 }
  0x95   :  { %v87_v46 = vpop.permute.xlu1 %86  ;;  %v84_v47 = vpop.permute.xlu0 %83 }
  0x96   :  { %vm135_vm15 = vcmp.eq.s32.totalorder %v1926_v36, %v87_v46  ;;  %vm134_vm0 = vcmp.eq.s32.totalorder %v1926_v36, %v84_v47 }
  0x97   :  { %vm1443_vm1 = vmpackc.low %vm135_vm15, %vm134_vm0 }
  0x99   :  { %v93_v48 = vpop.permute.xlu1 %92  ;;  %v90_v49 = vpop.permute.xlu0 %89 }
  0x9a   :  { %vm137_vm2 = vcmp.eq.s32.totalorder %v1926_v36, %v93_v48  ;;  %1597 = vmatmul.mubr.msk.bf16.gmra.mrb[8].mxu0 %vm1443_vm1, %v1791_v39  ;;  %vm136_vm3 = vcmp.eq.s32.totalorder %v1926_v36, %v90_v49 }
  0x9b   :  { %vm1445_vm4 = vmpackc.low %vm137_vm2, %vm136_vm3 }
  0x9c   :  { %1600 = vmatprep.mubr.msk.bf16.mxu0 %vm1445_vm4, %v1791_v39  ;;  %vm519_vm4 = vcmask 261120  }
  0x9d   :  { %v99_v50 = vpop.permute.xlu1 %98  ;;  %v96_v51 = vpop.permute.xlu0 %95 }
  0x9e   :  { %vm139_vm5 = vcmp.eq.s32.totalorder %v1926_v36, %v99_v50  ;;  %vm138_vm6 = vcmp.eq.s32.totalorder %v1926_v36, %v96_v51 }
  0x9f   :  { %vm1447_vm7 = vmpackc.low %vm139_vm5, %vm138_vm6  ;;  %vm437_vm5 = vcmask 1046528   ;;  %vm774_vm6 = vcmask 1045504  }
  0xa1   :  { %v105_v52 = vpop.permute.xlu1 %104  ;;  %v102_v53 = vpop.permute.xlu0 %101 }
  0xa2   :  { %vm141_vm8 = vcmp.eq.s32.totalorder %v1926_v36, %v105_v52  ;;  %1601 = vmatmul.mubr.msk.bf16.gmra.mrb[12].mxu0 %vm1447_vm7, %v1791_v39  ;;  %vm140_vm9 = vcmp.eq.s32.totalorder %v1926_v36, %v102_v53  ;;  %vm993_vm7 = vcmask 1044480  }
  0xa3   :  { %vm1449_vm10 = vmpackc.low %vm141_vm8, %vm140_vm9  ;;  %vm1254_vm8 = vcmp.lt.s32.totalorder %v1926_v36, 8 }
  0xa4   :  { %1604 = vmatprep.mubr.msk.bf16.mxu0 %vm1449_vm10, %v1791_v39  ;;  %vm1354_vm10 = vcmask 1041409  }
  0xa5   :  { %v111_v54 = vpop.permute.xlu1 %110  ;;  %v108_v55 = vpop.permute.xlu0 %107 }
  0xa6   :  { %vm143_vm11 = vcmp.eq.s32.totalorder %v1926_v36, %v111_v54  ;;  %vm142_vm12 = vcmp.eq.s32.totalorder %v1926_v36, %v108_v55  ;;  %v2010_v55 = vld [vmem:[%s2246_s2 + $0x30] sm:$0xff]  }
  0xa7   :  { %vm1451_vm13 = vmpackc.low %vm143_vm11, %vm142_vm12  ;;  %vm1357_vm11 = vcmask 1042434   ;;  %vm1360_vm12 = vcmask 1043459  }
  0xa9   :  { %v117_v56 = vpop.permute.xlu1 %116  ;;  %v114_v57 = vpop.permute.xlu0 %113 }
  0xaa   :  { %vm145_vm14 = vcmp.eq.s32.totalorder %v1926_v36, %v117_v56  ;;  %1605 = vmatmul.mubr.msk.bf16.gmra.mrb[16].mxu0 %vm1451_vm13, %v1791_v39  ;;  %vm144_vm15 = vcmp.eq.s32.totalorder %v1926_v36, %v114_v57  ;;  %vm1363_vm13 = vcmask 1044484  }
  0xab   :  { %vm1453_vm0 = vmpackc.low %vm145_vm14, %vm144_vm15  ;;  %vm1366_vm14 = vcmask 1045509   ;;  %vm1369_vm15 = vcmask 1046534  }
  0xac   :  { %1608 = vmatprep.mubr.msk.bf16.mxu0 %vm1453_vm0, %v1791_v39  ;;  %vm1372_vm0 = vcmask 1047559  }
  0xad   :  { %v123_v58 = vpop.permute.xlu1 %122  ;;  %v120_v59 = vpop.permute.xlu0 %119 }
  0xae   :  { %vm147_vm1 = vcmp.eq.s32.totalorder %v1926_v36, %v123_v58  ;;  %vm146_vm2 = vcmp.eq.s32.totalorder %v1926_v36, %v120_v59 }
  0xaf   :  { %vm1455_vm3 = vmpackc.low %vm147_vm1, %vm146_vm2 }
  0xb2   :  { %1609 = vmatmul.mubr.msk.bf16.gmra.mrb[20].mxu0 %vm1455_vm3, %v1791_v39  ;;  %v1759_v39 = vld [vmem:[%s2246_s2 + $0x28] sm:$0xff]  }
 0x15d   :  { %v1590_v1 = vpop.f32.mrb[0].mxu0 }
 0x15e   :  { %v306_v2 = vpop.f32.mrb[1].mxu0  ;;  %v441_v4 = vrot.slane %v1590_v1, 1  ;;  %v778_v5 = vrot.slane %v1590_v1, 2  ;;  %v997_v13 = vrot.slane %v1590_v1, 3 }
 0x15f   :  { %v1591_v3 = vpop.f32.mrb[2].mxu0  ;;  %v438_v6 = vrot.slane %v306_v2, 1  ;;  %v775_v7 = vrot.slane %v306_v2, 2  ;;  %v994_v14 = vrot.slane %v306_v2, 3 }
 0x160   :  { %v309_v8 = vpop.f32.mrb[3].mxu0  ;;  %v443_v23 = vrot.slane %v1591_v3, 1  ;;  %v780_v24 = vrot.slane %v1591_v3, 2  ;;  %v999_v27 = vrot.slane %v1591_v3, 3 }
 0x161   :  { %v439_v9 = vrot.slane %v309_v8, 1  ;;  %v776_v10 = vrot.slane %v309_v8, 2  ;;  %v995_v11 = vrot.slane %v309_v8, 3  ;;  %v401_v12 = vpack.c.bf16 %v309_v8, %v306_v2 }
 0x163   :  { %1636 = vmatprep.mubr.msk.bf16.mxu1 %vm519_vm4, %v401_v12  ;;  %v440_v15 = vsel %vm437_vm5, %v438_v6, %v439_v9  ;;  %v442_v16 = vsel %vm437_vm5, %v439_v9, %v441_v4  ;;  %v1971_v17 = vsel %vm774_vm6, %v775_v7, %v776_v10  ;;  %v1974_v18 = vsel %vm774_vm6, %v776_v10, %v778_v5 }
 0x164   :  { %v494_v19 = vpack.c.bf16 %v442_v16, %v440_v15  ;;  %v831_v20 = vpack.c.bf16 %v1974_v18, %v1971_v17  ;;  %v1979_v21 = vsel %vm993_vm7, %v994_v14, %v995_v11  ;;  %v1982_v22 = vsel %vm993_vm7, %v995_v11, %v997_v13  ;;  %v1761_v17 = vld [vmem:[%s2246_s2 + $0x38] sm:$0xff]  }
 0x165   :  { %v1594_v25 = vpop.f32.mrb[4].mxu0  ;;  %v1050_v26 = vpack.c.bf16 %v1982_v22, %v1979_v21 }
 0x166   :  { %v448_v28 = vrot.slane %v1594_v25, 1  ;;  %v785_v29 = vrot.slane %v1594_v25, 2  ;;  %v1004_v30 = vrot.slane %v1594_v25, 3  ;;  %v322_v31 = vpop.f32.mrb[5].mxu0  ;;  %1616 = vmatprep.mubr.msk.bf16.mxu0 %vm519_vm4, %v494_v19 }
 0x167   :  { %v402_v32 = vpack.c.bf16 %v322_v31, %v1591_v3  ;;  %v444_v34 = vrot.slane %v322_v31, 1  ;;  %v781_v35 = vrot.slane %v322_v31, 2  ;;  %v1000_v37 = vrot.slane %v322_v31, 3  ;;  %v1595_v38 = vpop.f32.mrb[6].mxu0 }
 0x168   :  { %v403_v40 = vpack.c.bf16 %v1595_v38, %v1594_v25  ;;  %v449_v41 = vrot.slane %v1595_v38, 1  ;;  %v786_v42 = vrot.slane %v1595_v38, 2  ;;  %v1005_v43 = vrot.slane %v1595_v38, 3  ;;  %v325_v44 = vpop.f32.mrb[7].mxu0 }
 0x169   :  { %v445_v45 = vsel %vm437_vm5, %v443_v23, %v444_v34  ;;  %v446_v46 = vrot.slane %v325_v44, 1  ;;  %v1992_v47 = vsel %vm774_vm6, %v780_v24, %v781_v35  ;;  %v783_v48 = vrot.slane %v325_v44, 2  ;;  %1637 = vmatmul.mubr.msk.bf16.vlgmr.msra.gmra.mrb[0].mxu1 %vm519_vm4, %v402_v32 }
 0x16a   :  { %v1996_v49 = vsel %vm993_vm7, %v999_v27, %v1000_v37  ;;  %v1002_v50 = vrot.slane %v325_v44, 3  ;;  %1640 = vmatprep.mubr.msk.bf16.mxu1 %vm519_vm4, %v403_v40  ;;  %1653 = vmatpush3.bf16.msra.mxu1 %v1758_v0  ;;  %v450_v51 = vsel %vm437_vm5, %v448_v28, %v449_v41  ;;  %v2001_v52 = vsel %vm774_vm6, %v785_v29, %v786_v42 }
 0x16b   :  { %v447_v53 = vsel %vm437_vm5, %v444_v34, %v446_v46  ;;  %v2005_v54 = vsel %vm774_vm6, %v781_v35, %v783_v48  ;;  %1654 = vmatprep.subr.bf16.mxu1 %v1759_v39  ;;  %v2013_v56 = vsel %vm993_vm7, %v1004_v30, %v1005_v43 }
 0x16c   :  { %v495_v57 = vpack.c.bf16 %v447_v53, %v445_v45  ;;  %v832_v58 = vpack.c.bf16 %v2005_v54, %v1992_v47  ;;  %v2018_v59 = vsel %vm993_vm7, %v1000_v37, %v1002_v50 }
 0x16d   :  { %v1051_v60 = vpack.c.bf16 %v2018_v59, %v1996_v49  ;;  %v1598_v61 = vpop.f32.mrb[8].mxu0 }
 0x16e   :  { %v454_v62 = vrot.slane %v1598_v61, 1  ;;  %v338_v63 = vpop.f32.mrb[9].mxu0  ;;  %1617 = vmatmul.mubr.msk.bf16.vlgmr.msra.gmra.mrb[24].mxu0 %vm519_vm4, %v495_v57  ;;  %1655 = vmatpush3.bf16.msra.mxu1 %v1759_v39  ;;  %v791_v0 = vrot.slane %v1598_v61, 2  ;;  %v1010_v5 = vrot.slane %v1598_v61, 3 }
 0x16f   :  { %v451_v1 = vrot.slane %v338_v63, 1  ;;  %v788_v2 = vrot.slane %v338_v63, 2  ;;  %v1007_v3 = vrot.slane %v338_v63, 3  ;;  %v1599_v4 = vpop.f32.mrb[10].mxu0  ;;  %1672 = vmatprep.subr.bf16.mxu1 %v2010_v55 }
 0x170   :  { %v456_v6 = vrot.slane %v1599_v4, 1  ;;  %v793_v7 = vrot.slane %v1599_v4, 2  ;;  %v1012_v8 = vrot.slane %v1599_v4, 3  ;;  %v341_v9 = vpop.f32.mrb[11].mxu0 }
 0x171   :  { %v452_v10 = vsel %vm437_vm5, %v449_v41, %v451_v1  ;;  %v2026_v11 = vsel %vm774_vm6, %v786_v42, %v788_v2  ;;  %v2029_v12 = vsel %vm993_vm7, %v1005_v43, %v1007_v3  ;;  %v404_v13 = vpack.c.bf16 %v1598_v61, %v341_v9 }
 0x172   :  { %v457_v14 = vsel %vm437_vm5, %v454_v62, %v456_v6  ;;  %v2033_v15 = vsel %vm774_vm6, %v791_v0, %v793_v7  ;;  %v2036_v16 = vsel %vm993_vm7, %v1010_v5, %v1012_v8  ;;  %v453_v19 = vrot.slane %v341_v9, 1 }
 0x173   :  { %v790_v23 = vrot.slane %v341_v9, 2  ;;  %v1009_v24 = vrot.slane %v341_v9, 3  ;;  %1641 = vmatmul.mubr.msk.bf16.gmra.mrb[4].mxu1 %vm519_vm4, %v404_v13  ;;  %v496_v25 = vpack.c.bf16 %v452_v10, %v450_v51  ;;  %v833_v27 = vpack.c.bf16 %v2026_v11, %v2001_v52 }
 0x174   :  { %v455_v28 = vsel %vm437_vm5, %v453_v19, %v454_v62  ;;  %v1052_v29 = vpack.c.bf16 %v2029_v12, %v2013_v56 }
 0x175   :  { %1620 = vmatprep.mubr.msk.bf16.mxu0 %vm519_vm4, %v496_v25  ;;  %v1602_v30 = vpop.f32.mrb[12].mxu0  ;;  %v497_v31 = vpack.c.bf16 %v457_v14, %v455_v28  ;;  %v2046_v32 = vsel %vm774_vm6, %v790_v23, %v791_v0  ;;  %v2049_v34 = vsel %vm993_vm7, %v1009_v24, %v1010_v5 }
 0x176   :  { %v354_v35 = vpop.f32.mrb[13].mxu0  ;;  %v834_v37 = vpack.c.bf16 %v2033_v15, %v2046_v32  ;;  %v1053_v39 = vpack.c.bf16 %v2036_v16, %v2049_v34  ;;  %v461_v40 = vrot.slane %v1602_v30, 1  ;;  %v798_v41 = vrot.slane %v1602_v30, 2 }
 0x177   :  { %1621 = vmatmul.mubr.msk.bf16.gmra.mrb[28].mxu0 %vm519_vm4, %v497_v31  ;;  %v1603_v38 = vpop.f32.mrb[14].mxu0  ;;  %v458_v42 = vrot.slane %v354_v35, 1  ;;  %v795_v43 = vrot.slane %v354_v35, 2  ;;  %v1017_v51 = vrot.slane %v1602_v30, 3  ;;  %v1014_v53 = vrot.slane %v354_v35, 3 }
 0x178   :  { %v357_v44 = vpop.f32.mrb[15].mxu0  ;;  %v463_v4 = vrot.slane %v1603_v38, 1  ;;  %v800_v5 = vrot.slane %v1603_v38, 2  ;;  %v1019_v8 = vrot.slane %v1603_v38, 3  ;;  %v1252_v15 = vshrl.u32 %v50_v33, 7 }
 0x179   :  { %v405_v45 = vpack.c.bf16 %v357_v44, %v354_v35  ;;  %v459_v46 = vrot.slane %v357_v44, 1  ;;  %v796_v48 = vrot.slane %v357_v44, 2  ;;  %v1015_v50 = vrot.slane %v357_v44, 3 }
 0x17b   :  { %1644 = vmatprep.mubr.msk.bf16.mxu1 %vm519_vm4, %v405_v45  ;;  %v460_v57 = vsel %vm437_vm5, %v458_v42, %v459_v46  ;;  %v462_v61 = vsel %vm437_vm5, %v459_v46, %v461_v40  ;;  %v2060_v62 = vsel %vm774_vm6, %v795_v43, %v796_v48  ;;  %v2063_v63 = vsel %vm774_vm6, %v796_v48, %v798_v41 }
 0x17c   :  { %v498_v0 = vpack.c.bf16 %v462_v61, %v460_v57  ;;  %v835_v1 = vpack.c.bf16 %v2063_v63, %v2060_v62  ;;  %v2068_v2 = vsel %vm993_vm7, %v1014_v53, %v1015_v50  ;;  %v2071_v3 = vsel %vm993_vm7, %v1015_v50, %v1017_v51 }
 0x17d   :  { %v1606_v6 = vpop.f32.mrb[16].mxu0  ;;  %v1054_v7 = vpack.c.bf16 %v2071_v3, %v2068_v2  ;;  %v1792_v63 = vmov 13  }
 0x17e   :  { %v468_v9 = vrot.slane %v1606_v6, 1  ;;  %v805_v10 = vrot.slane %v1606_v6, 2  ;;  %v1024_v13 = vrot.slane %v1606_v6, 3  ;;  %v370_v14 = vpop.f32.mrb[17].mxu0  ;;  %1624 = vmatprep.mubr.msk.bf16.mxu0 %vm519_vm4, %v498_v0 }
 0x17f   :  { %v406_v19 = vpack.c.bf16 %v370_v14, %v1603_v38  ;;  %v464_v23 = vrot.slane %v370_v14, 1  ;;  %v801_v24 = vrot.slane %v370_v14, 2  ;;  %v1020_v25 = vrot.slane %v370_v14, 3  ;;  %v1607_v28 = vpop.f32.mrb[18].mxu0 }
 0x180   :  { %v407_v30 = vpack.c.bf16 %v1607_v28, %v1606_v6  ;;  %v469_v31 = vrot.slane %v1607_v28, 1  ;;  %v806_v35 = vrot.slane %v1607_v28, 2  ;;  %v1025_v40 = vrot.slane %v1607_v28, 3  ;;  %v373_v41 = vpop.f32.mrb[19].mxu0 }
 0x181   :  { %v466_v42 = vrot.slane %v373_v41, 1  ;;  %v803_v43 = vrot.slane %v373_v41, 2  ;;  %v1022_v44 = vrot.slane %v373_v41, 3  ;;  %1645 = vmatmul.mubr.msk.bf16.gmra.mrb[8].mxu1 %vm519_vm4, %v406_v19  ;;  %v465_v45 = vsel %vm437_vm5, %v463_v4, %v464_v23 }
 0x182   :  { %1648 = vmatprep.mubr.msk.bf16.mxu1 %vm519_vm4, %v407_v30  ;;  %v470_v38 = vsel %vm437_vm5, %v468_v9, %v469_v31  ;;  %v802_v46 = vsel %vm774_vm6, %v800_v5, %v801_v24  ;;  %v807_v48 = vsel %vm774_vm6, %v805_v10, %v806_v35  ;;  %v1021_v50 = vsel %vm993_vm7, %v1019_v8, %v1020_v25 }
 0x183   :  { %v467_v51 = vsel %vm437_vm5, %v464_v23, %v466_v42  ;;  %v804_v53 = vsel %vm774_vm6, %v801_v24, %v803_v43  ;;  %v1023_v57 = vsel %vm993_vm7, %v1020_v25, %v1022_v44  ;;  %v1026_v61 = vsel %vm993_vm7, %v1024_v13, %v1025_v40 }
 0x184   :  { %v499_v0 = vpack.c.bf16 %v467_v51, %v465_v45  ;;  %v836_v4 = vpack.c.bf16 %v804_v53, %v802_v46  ;;  %v1055_v6 = vpack.c.bf16 %v1023_v57, %v1021_v50 }
 0x185   :  { %v1610_v14 = vpop.f32.mrb[20].mxu0 }
 0x186   :  { %v474_v19 = vrot.slane %v1610_v14, 1  ;;  %v386_v9 = vpop.f32.mrb[21].mxu0  ;;  %1625 = vmatmul.mubr.msk.bf16.gmra.mrb[32].mxu0 %vm519_vm4, %v499_v0  ;;  %v811_v5 = vrot.slane %v1610_v14, 2  ;;  %v1030_v23 = vrot.slane %v1610_v14, 3 }
 0x187   :  { %v471_v10 = vrot.slane %v386_v9, 1  ;;  %v808_v28 = vrot.slane %v386_v9, 2  ;;  %v1027_v8 = vrot.slane %v386_v9, 3  ;;  %v1611_v30 = vpop.f32.mrb[22].mxu0 }
 0x188   :  { %v476_v41 = vrot.slane %v1611_v30, 1  ;;  %v813_v24 = vrot.slane %v1611_v30, 2  ;;  %v1032_v42 = vrot.slane %v1611_v30, 3  ;;  %v389_v25 = vpop.f32.mrb[23].mxu0 }
 0x189   :  { %v472_v13 = vsel %vm437_vm5, %v469_v31, %v471_v10  ;;  %v809_v43 = vsel %vm774_vm6, %v806_v35, %v808_v28  ;;  %v1028_v44 = vsel %vm993_vm7, %v1025_v40, %v1027_v8  ;;  %v408_v45 = vpack.c.bf16 %v1610_v14, %v389_v25 }
 0x18a   :  { %v477_v46 = vsel %vm437_vm5, %v474_v19, %v476_v41  ;;  %v814_v50 = vsel %vm774_vm6, %v811_v5, %v813_v24  ;;  %v1033_v51 = vsel %vm993_vm7, %v1030_v23, %v1032_v42  ;;  %v473_v53 = vrot.slane %v389_v25, 1 }
 0x18b   :  { %v810_v57 = vrot.slane %v389_v25, 2  ;;  %v1029_v0 = vrot.slane %v389_v25, 3  ;;  %1649 = vmatmul.mubr.msk.bf16.gmra.mrb[12].mxu1 %vm519_vm4, %v408_v45  ;;  %v500_v9 = vpack.c.bf16 %v472_v13, %v470_v38  ;;  %v837_v30 = vpack.c.bf16 %v809_v43, %v807_v48 }
 0x18c   :  { %1656 = vmatprep.mubr.msk.bf16.mxu1 %vm519_vm4, %v831_v20  ;;  %v475_v31 = vsel %vm437_vm5, %v473_v53, %v474_v19  ;;  %v1056_v35 = vpack.c.bf16 %v1028_v44, %v1026_v61 }
 0x18d   :  { %1628 = vmatprep.mubr.msk.bf16.mxu0 %vm519_vm4, %v500_v9  ;;  %v501_v40 = vpack.c.bf16 %v477_v46, %v475_v31  ;;  %v812_v14 = vsel %vm774_vm6, %v810_v57, %v811_v5  ;;  %v1031_v10 = vsel %vm993_vm7, %v1029_v0, %v1030_v23 }
 0x18e   :  { %v838_v28 = vpack.c.bf16 %v814_v50, %v812_v14  ;;  %v1057_v8 = vpack.c.bf16 %v1033_v51, %v1031_v10 }
 0x18f   :  { %1629 = vmatmul.mubr.msk.bf16.gmra.mrb[36].mxu0 %vm519_vm4, %v501_v40 }
 0x193   :  { %1657 = vmatmul.mubr.msk.bf16.vlgmr.msra.gmra.mrb[0].mxu1 %vm519_vm4, %v832_v58 }
 0x194   :  { %1673 = vmatpush3.bf16.msra.mxu1 %v2010_v55  ;;  %1660 = vmatprep.mubr.msk.bf16.mxu1 %vm519_vm4, %v833_v27 }
 0x195   :  { %1674 = vmatprep.subr.bf16.mxu1 %v1761_v17 }
 0x198   :  { %1675 = vmatpush3.bf16.msra.mxu1 %v1761_v17 }
 0x19b   :  { %1661 = vmatmul.mubr.msk.bf16.gmra.mrb[4].mxu1 %vm519_vm4, %v834_v37 }
 0x19c   :  { %1664 = vmatprep.mubr.msk.bf16.mxu1 %vm519_vm4, %v835_v1  ;;  %v1255_v1 = vsel %vm1254_vm8, 14, %v1792_v63  ;;  %v2198_v63 = vld [vmem:[%s2248_s4] ss:$0 sm:$0xff] }
 0x1a3   :  { %1665 = vmatmul.mubr.msk.bf16.gmra.mrb[8].mxu1 %vm519_vm4, %v836_v4 }
 0x1a4   :  { %1668 = vmatprep.mubr.msk.bf16.mxu1 %vm519_vm4, %v837_v30 }
 0x1ab   :  { %1669 = vmatmul.mubr.msk.bf16.gmra.mrb[12].mxu1 %vm519_vm4, %v838_v28 }
 0x1ac   :  { %1676 = vmatprep.mubr.msk.bf16.mxu1 %vm519_vm4, %v1050_v26 }
 0x1b3   :  { %1677 = vmatmul.mubr.msk.bf16.vlgmr.msra.gmra.mrb[0].mxu1 %vm519_vm4, %v1051_v60 }
 0x1b4   :  { %1680 = vmatprep.mubr.msk.bf16.mxu1 %vm519_vm4, %v1052_v29  ;;  %v2169_v29 = vld [vmem:[%s2247_s3] ss:$0 sm:$0xff] }
 0x1bb   :  { %1681 = vmatmul.mubr.msk.bf16.gmra.mrb[4].mxu1 %vm519_vm4, %v1053_v39  ;;  %v1253_v39 = vadd.s32 8, %v1252_v15 }
 0x1bc   :  { %1684 = vmatprep.mubr.msk.bf16.mxu1 %vm519_vm4, %v1054_v7 }
 0x1bd   :  { %vm2174_vm9 = vcmp.lt.s32.totalorder %v1253_v39, %v1255_v1 }
 0x1c3   :  { %1685 = vmatmul.mubr.msk.bf16.gmra.mrb[8].mxu1 %vm519_vm4, %v1055_v6 }
 0x1c4   :  { %1688 = vmatprep.mubr.msk.bf16.mxu1 %vm519_vm4, %v1056_v35 }
 0x1cb   :  { %1689 = vmatmul.mubr.msk.bf16.gmra.mrb[12].mxu1 %vm519_vm4, %v1057_v8 }
 0x241   :  { %v1618_v18 = vpop.f32.mrb[24].mxu0 }
 0x242   :  { %v578_v20 = vpop.f32.mrb[25].mxu0 }
 0x243   :  { %v1619_v21 = vpop.f32.mrb[26].mxu0 }
 0x244   :  { %v581_v22 = vpop.f32.mrb[27].mxu0 }
 0x24a   :  { %v1622_v26 = vpop.f32.mrb[28].mxu0 }
 0x24b   :  { %v594_v47 = vpop.f32.mrb[29].mxu0 }
 0x24c   :  { %v1623_v49 = vpop.f32.mrb[30].mxu0 }
 0x24d   :  { %v597_v52 = vpop.f32.mrb[31].mxu0 }
 0x259   :  { %v1626_v54 = vpop.f32.mrb[32].mxu0 }
 0x25a   :  { %v2150_v55 = vpop.f32.mrb[33].mxu0 }
 0x25b   :  { %v2152_v56 = vpop.f32.mrb[34].mxu0 }
 0x25c   :  { %v2154_v58 = vpop.f32.mrb[35].mxu0 }
 0x262   :  { %v2156_v59 = vpop.f32.mrb[36].mxu0 }
 0x263   :  { %v2158_v60 = vpop.f32.mrb[37].mxu0 }
 0x264   :  { %v2160_v11 = vpop.f32.mrb[38].mxu0 }
 0x265   :  { %v2162_v12 = vpop.f32.mrb[39].mxu0 }
 0x286   :  { %v1678_v16 = vpop.f32.mrb[0].mxu1 }
 0x287   :  { %v1692_v27 = vadd.f32 %v1678_v16, %v1618_v18  ;;  %v1133_v32 = vpop.f32.mrb[1].mxu1 }
 0x288   :  { %v1693_v34 = vadd.f32 %v1133_v32, %v578_v20  ;;  %v1679_v37 = vpop.f32.mrb[2].mxu1 }
 0x289   :  { %v1694_v62 = vadd.f32 %v1679_v37, %v1619_v21  ;;  %v1136_v2 = vpop.f32.mrb[3].mxu1  ;;  %v1221_v3 = vadd.f32 %v1692_v27, %v2169_v29 }
 0x28a   :  { %v1695_v33 = vadd.f32 %v1136_v2, %v581_v22  ;;  %v1219_v7 = vadd.f32 %v1693_v34, %v2169_v29 }
 0x28b   :  { %v1222_v36 = vadd.f32 %v1694_v62, %v2169_v29  ;;  %v1237_v4 = vmax.f32 %v1221_v3, 0.0 }
 0x28c   :  { %v1220_v48 = vadd.f32 %v1695_v33, %v2169_v29  ;;  %v1235_v5 = vmax.f32 %v1219_v7, 0.0 }
 0x28d   :  { %v1238_v61 = vmax.f32 %v1222_v36, 0.0 }
 0x28e   :  { %v1236_v6 = vmax.f32 %v1220_v48, 0.0  ;;  %v1682_v19 = vpop.f32.mrb[4].mxu1 }
 0x28f   :  { %v1261_v23 = vsel %vm2174_vm9, %v1238_v61, 0.0  ;;  %v1696_v41 = vadd.f32 %v1682_v19, %v1622_v26  ;;  %v1149_v24 = vpop.f32.mrb[5].mxu1 }
 0x290   :  { %v1281_v42 = vmax.f32 %v1237_v4, %v1261_v23  ;;  %v1259_v25 = vsel %vm2174_vm9, %v1236_v6, 0.0  ;;  %v1697_v13 = vadd.f32 %v1149_v24, %v594_v47  ;;  %v1683_v43 = vpop.f32.mrb[6].mxu1 }
 0x291   :  { %v1274_v44 = vmax.f32 %v1235_v5, %v1259_v25  ;;  %v1698_v45 = vadd.f32 %v1683_v43, %v1623_v49  ;;  %v1152_v46 = vpop.f32.mrb[7].mxu1  ;;  %v1225_v51 = vadd.f32 %v1696_v41, %v2169_v29 }
 0x292   :  { %v1282_v50 = vrot.slane %v1281_v42, 4  ;;  %v1699_v53 = vadd.f32 %v1152_v46, %v597_v52  ;;  %v1223_v0 = vadd.f32 %v1697_v13, %v2169_v29 }
 0x293   :  { %v1275_v57 = vrot.slane %v1274_v44, 4  ;;  %v1226_v9 = vadd.f32 %v1698_v45, %v2169_v29  ;;  %v1241_v10 = vmax.f32 %v1225_v51, 0.0 }
 0x294   :  { %v1283_v30 = vmax.f32 %v1281_v42, %v1282_v50  ;;  %v1224_v31 = vadd.f32 %v1699_v53, %v2169_v29  ;;  %v1239_v18 = vmax.f32 %v1223_v0, 0.0 }
 0x295   :  { %v1276_v35 = vmax.f32 %v1274_v44, %v1275_v57  ;;  %v1242_v40 = vmax.f32 %v1226_v9, 0.0 }
 0x296   :  { %v1284_v14 = vrot.slane %v1283_v30, 2  ;;  %v1240_v28 = vmax.f32 %v1224_v31, 0.0  ;;  %v1686_v8 = vpop.f32.mrb[8].mxu1 }
 0x297   :  { %v1277_v17 = vrot.slane %v1276_v35, 2  ;;  %v1265_v20 = vsel %vm2174_vm9, %v1242_v40, 0.0  ;;  %v1700_v21 = vadd.f32 %v1686_v8, %v1626_v54  ;;  %v1165_v22 = vpop.f32.mrb[9].mxu1 }
 0x298   :  { %v1285_v26 = vmax.f32 %v1283_v30, %v1284_v14  ;;  %v1295_v47 = vmax.f32 %v1241_v10, %v1265_v20  ;;  %v1263_v49 = vsel %vm2174_vm9, %v1240_v28, 0.0  ;;  %v1701_v52 = vadd.f32 %v1165_v22, %v2150_v55  ;;  %v1687_v15 = vpop.f32.mrb[10].mxu1 }
 0x299   :  { %v1278_v16 = vmax.f32 %v1276_v35, %v1277_v17  ;;  %v1288_v27 = vmax.f32 %v1239_v18, %v1263_v49  ;;  %v1702_v32 = vadd.f32 %v1687_v15, %v2152_v56  ;;  %v1168_v34 = vpop.f32.mrb[11].mxu1  ;;  %v1229_v62 = vadd.f32 %v1700_v21, %v2169_v29 }
 0x29a   :  { %v1286_v37 = vrot.slane %v1285_v26, 1  ;;  %v1296_v39 = vrot.slane %v1295_v47, 4  ;;  %v1703_v54 = vadd.f32 %v1168_v34, %v2154_v58  ;;  %v1227_v55 = vadd.f32 %v1701_v52, %v2169_v29 }
 0x29b   :  { %v1279_v1 = vrot.slane %v1278_v16, 1  ;;  %v1289_v2 = vrot.slane %v1288_v27, 4  ;;  %v1230_v3 = vadd.f32 %v1702_v32, %v2169_v29  ;;  %v1245_v6 = vmax.f32 %v1229_v62, 0.0 }
 0x29c   :  { %v1287_v33 = vmax.f32 %v1285_v26, %v1286_v37  ;;  %v1297_v56 = vmax.f32 %v1295_v47, %v1296_v39  ;;  %v1228_v7 = vadd.f32 %v1703_v54, %v2169_v29  ;;  %v1243_v41 = vmax.f32 %v1227_v55, 0.0 }
 0x29d   :  { %v1280_v36 = vmax.f32 %v1278_v16, %v1279_v1  ;;  %v1290_v48 = vmax.f32 %v1288_v27, %v1289_v2  ;;  %v1246_v61 = vmax.f32 %v1230_v3, 0.0 }
 0x29e   :  { %v1338_v58 = vmul.f32 %v2198_v63, %v1287_v33  ;;  %v1298_v4 = vrot.slane %v1297_v56, 2  ;;  %v1244_v19 = vmax.f32 %v1228_v7, 0.0  ;;  %v1690_v5 = vpop.f32.mrb[12].mxu1 }
 0x29f   :  { %v1291_v23 = vrot.slane %v1290_v48, 2  ;;  %v1269_v24 = vsel %vm2174_vm9, %v1246_v61, 0.0  ;;  %v1704_v42 = vadd.f32 %v1690_v5, %v2156_v59  ;;  %v1181_v25 = vpop.f32.mrb[13].mxu1  ;;  %v1337_v13 = vmul.f32 %v2198_v63, %v1280_v36 }
 0x2a0   :  { %v1299_v43 = vmax.f32 %v1297_v56, %v1298_v4  ;;  %v1309_v44 = vmax.f32 %v1245_v6, %v1269_v24  ;;  %v1267_v45 = vsel %vm2174_vm9, %v1244_v19, 0.0  ;;  %v1691_v46 = vpop.f32.mrb[14].mxu1  ;;  %v1353_v50 = vrot.slane %v1338_v58, 7 }
 0x2a1   :  { %v1292_v51 = vmax.f32 %v1290_v48, %v1291_v23  ;;  %v1302_v53 = vmax.f32 %v1243_v41, %v1267_v45  ;;  %v1705_v57 = vadd.f32 %v1181_v25, %v2158_v60  ;;  %v1184_v0 = vpop.f32.mrb[15].mxu1  ;;  %v1706_v31 = vadd.f32 %v1691_v46, %v2160_v11 }
 0x2a2   :  { %v1300_v9 = vrot.slane %v1299_v43, 1  ;;  %v1310_v30 = vrot.slane %v1309_v44, 4  ;;  %v1707_v59 = vadd.f32 %v1184_v0, %v2162_v12  ;;  %v1233_v14 = vadd.f32 %v1704_v42, %v2169_v29 }
 0x2a3   :  { %v1293_v35 = vrot.slane %v1292_v51, 1  ;;  %v1303_v40 = vrot.slane %v1302_v53, 4  ;;  %v1231_v10 = vadd.f32 %v1705_v57, %v2169_v29  ;;  %v1234_v17 = vadd.f32 %v1706_v31, %v2169_v29 }
 0x2a4   :  { %v1301_v28 = vmax.f32 %v1299_v43, %v1300_v9  ;;  %v1311_v8 = vmax.f32 %v1309_v44, %v1310_v30  ;;  %v1232_v18 = vadd.f32 %v1707_v59, %v2169_v29  ;;  %v1355_v21 = vsel %vm1354_vm10, %v1353_v50, %v1337_v13 }
 0x2a5   :  { %v1294_v60 = vmax.f32 %v1292_v51, %v1293_v35  ;;  %v1304_v20 = vmax.f32 %v1302_v53, %v1303_v40  ;;  %v1250_v22 = vmax.f32 %v1234_v17, 0.0  ;;  %v1249_v52 = vmax.f32 %v1233_v14, 0.0 }
 0x2a6   :  { %v1340_v11 = vmul.f32 %v2198_v63, %v1301_v28  ;;  %v1312_v12 = vrot.slane %v1311_v8, 2  ;;  %v1248_v26 = vmax.f32 %v1232_v18, 0.0  ;;  %v1247_v15 = vmax.f32 %v1231_v10, 0.0 }
 0x2a7   :  { %v1339_v47 = vmul.f32 %v2198_v63, %v1294_v60  ;;  %v1305_v49 = vrot.slane %v1304_v20, 2  ;;  %v1273_v27 = vsel %vm2174_vm9, %v1250_v22, 0.0  ;;  %v1378_v57 = vstv %s2249_s5 }
 0x2a8   :  { %v1313_v16 = vmax.f32 %v1311_v8, %v1312_v12  ;;  %v1271_v29 = vsel %vm2174_vm9, %v1248_v26, 0.0  ;;  %v1323_v37 = vmax.f32 %v1249_v52, %v1273_v27  ;;  %v1359_v54 = vrot.slane %v1340_v11, 5 }
 0x2a9   :  { %v1356_v32 = vrot.slane %v1339_v47, 6  ;;  %v1306_v34 = vmax.f32 %v1304_v20, %v1305_v49  ;;  %v1316_v39 = vmax.f32 %v1247_v15, %v1271_v29 }
 0x2aa   :  { %v1314_v62 = vrot.slane %v1313_v16, 1  ;;  %v1324_v2 = vrot.slane %v1323_v37, 4 }
 0x2ab   :  { %v1307_v1 = vrot.slane %v1306_v34, 1  ;;  %v1317_v55 = vrot.slane %v1316_v39, 4  ;;  %v1358_v3 = vsel %vm1357_vm11, %v1356_v32, %v1355_v21 }
 0x2ac   :  { %v1315_v33 = vmax.f32 %v1313_v16, %v1314_v62  ;;  %v1361_v56 = vsel %vm1360_vm12, %v1359_v54, %v1358_v3  ;;  %v1325_v36 = vmax.f32 %v1323_v37, %v1324_v2 }
 0x2ad   :  { %v1308_v7 = vmax.f32 %v1306_v34, %v1307_v1  ;;  %v1318_v48 = vmax.f32 %v1316_v39, %v1317_v55 }
 0x2ae   :  { %v1342_v38 = vmul.f32 %v2198_v63, %v1315_v33  ;;  %v1326_v61 = vrot.slane %v1325_v36, 2 }
 0x2af   :  { %v1319_v58 = vrot.slane %v1318_v48, 2  ;;  %v1341_v4 = vmul.f32 %v2198_v63, %v1308_v7 }
 0x2b0   :  { %v1327_v19 = vmax.f32 %v1325_v36, %v1326_v61  ;;  %v1365_v23 = vrot.slane %v1342_v38, 3 }
 0x2b1   :  { %v1320_v6 = vmax.f32 %v1318_v48, %v1319_v58  ;;  %v1362_v5 = vrot.slane %v1341_v4, 4 }
 0x2b2   :  { %v1328_v24 = vrot.slane %v1327_v19, 1 }
 0x2b3   :  { %v1321_v41 = vrot.slane %v1320_v6, 1  ;;  %v1364_v42 = vsel %vm1363_vm13, %v1362_v5, %v1361_v56 }
 0x2b4   :  { %v1367_v25 = vsel %vm1366_vm14, %v1365_v23, %v1364_v42  ;;  %v1329_v43 = vmax.f32 %v1327_v19, %v1328_v24 }
 0x2b5   :  { %v1322_v13 = vmax.f32 %v1320_v6, %v1321_v41 }
 0x2b6   :  { %v1344_v45 = vmul.f32 %v2198_v63, %v1329_v43 }
 0x2b7   :  { %v1343_v44 = vmul.f32 %v2198_v63, %v1322_v13 }
 0x2b8   :  { %v1371_v50 = vrot.slane %v1344_v45, 1 }
 0x2b9   :  { %v1368_v46 = vrot.slane %v1343_v44, 2 }
 0x2bb   :  { %v1370_v51 = vsel %vm1369_vm15, %v1368_v46, %v1367_v25 }
 0x2bc   :  { %v1373_v53 = vsel %vm1372_vm0, %v1371_v50, %v1370_v51 }
 0x2bd   :  { %1375 = vadd.xlane.f32.xlu0 %v1373_v53 }
 0x34a   :  { %v1376_v0 = vpop.xlane.xlu0 %1375 }
 0x34b   :  { %v1379_v9 = vadd.f32 %v1378_v57, %v1376_v0 }
 0x34d   :  { %v1511_v30 = vmul.f32 -1.442695, %v1379_v9 }
 0x34f   :  { %1762 = vpow2.f32 %v1511_v30 }
 0x359   :  { %v1763_v31 = vpop.eup %1762 }
 0x35a   :  { %v1383_v59 = vadd.f32 1.0, %v1763_v31 }
 0x35c   :  { %1764 = vrcp.f32 %v1383_v59 }
 0x366   :  { %v1765_v63 = vpop.eup %1764 }
 0x367   :  { %1386 = vst [vmem:[#allocation3] sm:$0xff] %v1765_v63 }
 0x368   :  { %1777 = shalt.err (!%p1774_p4)
}
 0x369   :  { %s1778_s9 = scalar_lea.hbm %s2250_s6, 128 }
 0x36a   :  { %p1779_p5 = scmp.ne.s32.totalorder %s2250_s6, %s1778_s9  ;;  %p1782_p6 = scmp.lt.u32.totalorder %s1778_s9, %s2250_s6 }
 0x36c   :  { %p1784_p7 = pnand %p1782_p6, %p1779_p5 }
 0x36e   :  { %1787 = shalt.err (!%p1784_p7)
}
 0x36f   :  { %1396 = dma.vmem_to_hbm [thread:$0]  %s1394_s7, 128, %s2250_s6, [#allocation4]  }
 0x370   :  { %1788 = dma.done.wait [#allocation4], 128  }
 0x371   :  { %1789 = vsyncadd [#allocation4], 4294967168 }
 0x372   :  { %1400 = vsyncpa [#allocation4], 1 }

</bundles_post_ra>
